<compile_context>
chip_gen: v5e
topology: v5e:2x2
jax: 0.10.0
libtpu: 0.0.40
codegen_flags: <defaults>
</compile_context>

<pallas_src>
import functools

import numpy as np
import jax
import jax.numpy as jnp
from jax import lax
from jax.experimental import pallas as pl
from jax.experimental.pallas import tpu as pltpu

BN_EPS = 1e-5


def _round_up(x, m):
    return ((x + m - 1) // m) * m


def _detect_tpu_budget():
    """Generation-keyed VMEM budget.
    v5e/v6e: 128 MiB physical VMEM -> big tiles.
    v7x / unknown: assume 64 MiB physical -> conservative budget, and prefer >= 2
    tiles along a 'parallel' axis so both TensorCores get work."""
    kind = ""
    try:
        kind = jax.devices()[0].device_kind.lower()
    except Exception:
        pass
    if ("v5" in kind) or ("v6" in kind):
        return 80 * 2**20, 100 * 2**20, False
    return 38 * 2**20, 46 * 2**20, True


_VMEM_BUDGET, _VMEM_LIMIT, _PREFER_TWO_TILES = _detect_tpu_budget()


# ----------------------------------------------------------------------------
# Pallas kernels: fused (patches @ W_folded) + shift + ReLU, bf16 out
# ----------------------------------------------------------------------------
def _conv_mm_kernel_single(p_ref, w_ref, shift_ref, o_ref, *, relu):
    # K fits in one tile: no scratch, no reduction axis.
    y = jnp.dot(p_ref[...], w_ref[...], preferred_element_type=jnp.float32)
    y = y + shift_ref[...]
    if relu:
        y = jnp.maximum(y, 0.0)
    o_ref[...] = y.astype(o_ref.dtype)


def _conv_mm_kernel_multi(p_ref, w_ref, shift_ref, o_ref, acc_ref, *, relu):
    # w_ref holds the FULL folded weight (nk, tk, tn) resident in VMEM; only the
    # patches tile is streamed along the (innermost) k axis.
    k = pl.program_id(2)
    prod = jnp.dot(p_ref[...], w_ref[k], preferred_element_type=jnp.float32)

    @pl.when(k == 0)
    def _init():
        acc_ref[...] = prod          # assignment init: no zero-fill store

    @pl.when(k > 0)
    def _accum():
        acc_ref[...] += prod

    @pl.when(k == pl.num_programs(2) - 1)
    def _finalize():
        y = acc_ref[...] + shift_ref[...]
        if relu:
            y = jnp.maximum(y, 0.0)
        o_ref[...] = y.astype(o_ref.dtype)


# ----------------------------------------------------------------------------
# Weight prep + tile selection
# ----------------------------------------------------------------------------
def prep_conv(w, bias, bn_scale=None):
    """Fold BN scale into the weights, pad Cout to a lane-dense multiple of 128,
    cast to bf16 and reshape into (nk, tk, Cout_pad) K-chunks."""
    _, _, cin, cout = w.shape
    K = 9 * cin
    if bn_scale is None:
        bn_scale = jnp.ones((cout,), jnp.float32)
    w_eff = (w * bn_scale).reshape(K, cout)          # exact fold
    shift = bias * bn_scale
    cout_pad = max(128, _round_up(cout, 128))
    if cout_pad != cout:
        w_eff = jnp.pad(w_eff, ((0, 0), (0, cout_pad - cout)))
        shift = jnp.pad(shift, (0, cout_pad - cout))
    tk = K if K <= 2304 else 2304
    assert K % tk == 0
    nk = K // tk
    wmat = w_eff.astype(jnp.bfloat16).reshape(nk, tk, cout_pad)
    return wmat, shift.reshape(1, cout_pad).astype(jnp.float32), cout


def _select_tiles(M, tk, nk, cout_pad):
    """Pick (tm, tn, M_pad) from a VMEM budget; tm is a divisor of M_pad so the
    output never needs an M slice unless M itself is not a multiple of 8."""
    M_pad = _round_up(max(M, 8), 8)
    tn = min(512, cout_pad)
    tm_cap = 2048 if tk <= 1152 else 1024     # scale M tile with K

    def cost(tm_, tn_):
        c = 2 * tm_ * tk * 2               # patches bf16, double-buffered
        c += 2 * nk * tk * tn_ * 2         # resident folded weight (2 buffers)
        c += 2 * tm_ * tn_ * 2             # bf16 output, double-buffered
        c += 2 * tn_ * 4                   # shift
        if nk > 1:
            c += tm_ * tn_ * 4             # f32 accumulator scratch
        return c

    cands = [t for t in (2048, 1024, 512, 256, 128, 64, 32, 16, 8) if t <= tm_cap]
    prefer_two = _PREFER_TWO_TILES and M_pad >= 16
    chosen = None
    for need_two in ((True, False) if prefer_two else (False,)):
        for tm in cands:
            if tm > M_pad or M_pad % tm:
                continue
            if need_two and (M_pad // tm) < 2:
                continue
            if cost(tm, tn) <= _VMEM_BUDGET:
                chosen = tm
                break
        if chosen is not None:
            break
    if chosen is None:
        chosen = 8                          # always fits the budget

    # v7x: if there is only one M tile, split Cout so the parallel j axis has >= 2
    # steps and both TensorCores get work.
    if _PREFER_TWO_TILES and (M_pad // chosen) == 1 and tn >= 256 and cout_pad == tn:
        tn //= 2
    return chosen, tn, M_pad


# ----------------------------------------------------------------------------
# Conv wrapper
# ----------------------------------------------------------------------------
def conv3x3_pallas(x, wmat, shift, cout, *, dirate=1, relu=True):
    """3x3 conv, stride 1, padding=dilation=dirate, fused BN shift + ReLU.
    x: (N,H,W,Cin) f32/bf16.  wmat: (nk, tk, Cout_pad) bf16.  Returns bf16 NHWC."""
    N, H, W, _ = x.shape
    nk, tk, cout_pad = wmat.shape
    K = nk * tk
    d = dirate

    # im2col glue in bf16 (halves the materialized-patch HBM traffic vs f32).
    # TODO(synk): fuse the 9-tap halo accumulation into the kernel to remove this.
    xb = x if x.dtype == jnp.bfloat16 else x.astype(jnp.bfloat16)
    xp = jnp.pad(xb, ((0, 0), (d, d), (d, d), (0, 0)))
    cols = [xp[:, kh * d: kh * d + H, kw * d: kw * d + W, :]
            for kh in range(3) for kw in range(3)]
    patches = jnp.concatenate(cols, axis=-1).reshape(N * H * W, K)

    M = N * H * W
    tm, tn, M_pad = _select_tiles(M, tk, nk, cout_pad)
    if M_pad != M:
        patches = jnp.pad(patches, ((0, M_pad - M), (0, 0)))

    if nk == 1:
        out = pl.pallas_call(
            functools.partial(_conv_mm_kernel_single, relu=relu),
            out_shape=jax.ShapeDtypeStruct((M_pad, cout_pad), jnp.bfloat16),
            grid=(cout_pad // tn, M_pad // tm),                 # j outermost
            in_specs=[
                pl.BlockSpec((tm, tk), lambda j, i: (i, 0)),
                pl.BlockSpec((tk, tn), lambda j, i: (0, j)),    # weight resident over i
                pl.BlockSpec((1, tn), lambda j, i: (0, j)),
            ],
            out_specs=pl.BlockSpec((tm, tn), lambda j, i: (i, j)),
            compiler_params=pltpu.CompilerParams(
                dimension_semantics=("parallel", "parallel"),
                vmem_limit_bytes=_VMEM_LIMIT),
        )(patches, wmat.reshape(tk, cout_pad), shift)
    else:
        out = pl.pallas_call(
            functools.partial(_conv_mm_kernel_multi, relu=relu),
            out_shape=jax.ShapeDtypeStruct((M_pad, cout_pad), jnp.bfloat16),
            grid=(cout_pad // tn, M_pad // tm, nk),             # j, i, k (k innermost)
            in_specs=[
                pl.BlockSpec((tm, tk), lambda j, i, k: (i, k)),
                pl.BlockSpec((nk, tk, tn), lambda j, i, k: (0, 0, j)),  # full-K resident
                pl.BlockSpec((1, tn), lambda j, i, k: (0, j)),
            ],
            out_specs=pl.BlockSpec((tm, tn), lambda j, i, k: (i, j)),
            scratch_shapes=[pltpu.VMEM((tm, tn), jnp.float32)],
            compiler_params=pltpu.CompilerParams(
                dimension_semantics=("parallel", "parallel", "arbitrary"),
                vmem_limit_bytes=_VMEM_LIMIT),
        )(patches, wmat, shift)

    if M_pad != M or cout_pad != cout:
        out = out[:M, :cout]
    return out.reshape(N, H, W, cout)


# ----------------------------------------------------------------------------
# Plain-JAX glue ops (bf16 dataflow)
# ----------------------------------------------------------------------------
def maxpool2x2_ceil(x):
    N, H, W, C = x.shape
    ph, pw = H % 2, W % 2
    if ph or pw:
        x = jnp.pad(x, ((0, 0), (0, ph), (0, pw), (0, 0)),
                    constant_values=-jnp.inf)
    return lax.reduce_window(x, -jnp.inf, lax.max,
                             (1, 2, 2, 1), (1, 2, 2, 1), 'VALID')


def up_like(src, tar):
    # F.interpolate(mode='bilinear', align_corners=False) equivalent (upsampling).
    return jax.image.resize(src, (src.shape[0], tar.shape[1], tar.shape[2],
                                  src.shape[3]), method='bilinear')


def cat(a, b):
    return jnp.concatenate([a, b], axis=-1)


def xla_conv3x3(x, w, b, *, stride=1):
    """Small / narrow convs (Cin=3 input conv, Cout=1 side convs) use XLA's
    native conv instead of the MXU matmul path."""
    y = lax.conv_general_dilated(
        x, w, window_strides=(stride, stride), padding=((1, 1), (1, 1)),
        dimension_numbers=('NHWC', 'HWIO', 'NHWC'))
    return y + b


# ----------------------------------------------------------------------------
# Deterministic parameter construction
# ----------------------------------------------------------------------------
class ParamGen:
    def __init__(self, seed=0):
        self._key = jax.random.PRNGKey(seed)
        self._n = 0

    def conv_params(self, cin, cout):
        self._n += 1
        k = jax.random.fold_in(self._key, self._n)
        std = float(np.sqrt(2.0 / (9 * cin)))
        w = jax.random.normal(k, (3, 3, cin, cout), jnp.float32) * std
        b = jnp.zeros((cout,), jnp.float32)
        return w, b


def make_rebnconv(p, in_ch, out_ch, dirate=1):
    w, b = p.conv_params(in_ch, out_ch)
    # eval-mode BN with fresh stats: gamma/sqrt(var+eps) = 1/sqrt(1+eps)
    s = jnp.full((out_ch,), 1.0 / np.sqrt(1.0 + BN_EPS), jnp.float32)
    wmat, shift, cout = prep_conv(w, b, s)

    def f(x):
        return conv3x3_pallas(x, wmat, shift, cout, dirate=dirate, relu=True)
    return f


# ----------------------------------------------------------------------------
# RSU blocks
# ----------------------------------------------------------------------------
def make_rsu7(p, in_ch, mid_ch, out_ch):
    cin = make_rebnconv(p, in_ch, out_ch, 1)
    c1 = make_rebnconv(p, out_ch, mid_ch, 1)
    c2 = make_rebnconv(p, mid_ch, mid_ch, 1)
    c3 = make_rebnconv(p, mid_ch, mid_ch, 1)
    c4 = make_rebnconv(p, mid_ch, mid_ch, 1)
    c5 = make_rebnconv(p, mid_ch, mid_ch, 1)
    c6 = make_rebnconv(p, mid_ch, mid_ch, 1)
    c7 = make_rebnconv(p, mid_ch, mid_ch, 2)
    c6d = make_rebnconv(p, mid_ch * 2, mid_ch, 1)
    c5d = make_rebnconv(p, mid_ch * 2, mid_ch, 1)
    c4d = make_rebnconv(p, mid_ch * 2, mid_ch, 1)
    c3d = make_rebnconv(p, mid_ch * 2, mid_ch, 1)
    c2d = make_rebnconv(p, mid_ch * 2, mid_ch, 1)
    c1d = make_rebnconv(p, mid_ch * 2, out_ch, 1)

    def f(x):
        hxin = cin(x)
        hx1 = c1(hxin); hx = maxpool2x2_ceil(hx1)
        hx2 = c2(hx);   hx = maxpool2x2_ceil(hx2)
        hx3 = c3(hx);   hx = maxpool2x2_ceil(hx3)
        hx4 = c4(hx);   hx = maxpool2x2_ceil(hx4)
        hx5 = c5(hx);   hx = maxpool2x2_ceil(hx5)
        hx6 = c6(hx)
        hx7 = c7(hx6)
        hx6d = c6d(cat(hx7, hx6)); h = up_like(hx6d, hx5)
        hx5d = c5d(cat(h, hx5));   h = up_like(hx5d, hx4)
        hx4d = c4d(cat(h, hx4));   h = up_like(hx4d, hx3)
        hx3d = c3d(cat(h, hx3));   h = up_like(hx3d, hx2)
        hx2d = c2d(cat(h, hx2));   h = up_like(hx2d, hx1)
        hx1d = c1d(cat(h, hx1))
        return hx1d + hxin
    return f


def make_rsu6(p, in_ch, mid_ch, out_ch):
    cin = make_rebnconv(p, in_ch, out_ch, 1)
    c1 = make_rebnconv(p, out_ch, mid_ch, 1)
    c2 = make_rebnconv(p, mid_ch, mid_ch, 1)
    c3 = make_rebnconv(p, mid_ch, mid_ch, 1)
    c4 = make_rebnconv(p, mid_ch, mid_ch, 1)
    c5 = make_rebnconv(p, mid_ch, mid_ch, 1)
    c6 = make_rebnconv(p, mid_ch, mid_ch, 2)
    c5d = make_rebnconv(p, mid_ch * 2, mid_ch, 1)
    c4d = make_rebnconv(p, mid_ch * 2, mid_ch, 1)
    c3d = make_rebnconv(p, mid_ch * 2, mid_ch, 1)
    c2d = make_rebnconv(p, mid_ch * 2, mid_ch, 1)
    c1d = make_rebnconv(p, mid_ch * 2, out_ch, 1)

    def f(x):
        hxin = cin(x)
        hx1 = c1(hxin); hx = maxpool2x2_ceil(hx1)
        hx2 = c2(hx);   hx = maxpool2x2_ceil(hx2)
        hx3 = c3(hx);   hx = maxpool2x2_ceil(hx3)
        hx4 = c4(hx);   hx = maxpool2x2_ceil(hx4)
        hx5 = c5(hx)
        hx6 = c6(hx5)
        hx5d = c5d(cat(hx6, hx5)); h = up_like(hx5d, hx4)
        hx4d = c4d(cat(h, hx4));   h = up_like(hx4d, hx3)
        hx3d = c3d(cat(h, hx3));   h = up_like(hx3d, hx2)
        hx2d = c2d(cat(h, hx2));   h = up_like(hx2d, hx1)
        hx1d = c1d(cat(h, hx1))
        return hx1d + hxin
    return f


def make_rsu5(p, in_ch, mid_ch, out_ch):
    cin = make_rebnconv(p, in_ch, out_ch, 1)
    c1 = make_rebnconv(p, out_ch, mid_ch, 1)
    c2 = make_rebnconv(p, mid_ch, mid_ch, 1)
    c3 = make_rebnconv(p, mid_ch, mid_ch, 1)
    c4 = make_rebnconv(p, mid_ch, mid_ch, 1)
    c5 = make_rebnconv(p, mid_ch, mid_ch, 2)
    c4d = make_rebnconv(p, mid_ch * 2, mid_ch, 1)
    c3d = make_rebnconv(p, mid_ch * 2, mid_ch, 1)
    c2d = make_rebnconv(p, mid_ch * 2, mid_ch, 1)
    c1d = make_rebnconv(p, mid_ch * 2, out_ch, 1)

    def f(x):
        hxin = cin(x)
        hx1 = c1(hxin); hx = maxpool2x2_ceil(hx1)
        hx2 = c2(hx);   hx = maxpool2x2_ceil(hx2)
        hx3 = c3(hx);   hx = maxpool2x2_ceil(hx3)
        hx4 = c4(hx)
        hx5 = c5(hx4)
        hx4d = c4d(cat(hx5, hx4)); h = up_like(hx4d, hx3)
        hx3d = c3d(cat(h, hx3));   h = up_like(hx3d, hx2)
        hx2d = c2d(cat(h, hx2));   h = up_like(hx2d, hx1)
        hx1d = c1d(cat(h, hx1))
        return hx1d + hxin
    return f


def make_rsu4(p, in_ch, mid_ch, out_ch):
    cin = make_rebnconv(p, in_ch, out_ch, 1)
    c1 = make_rebnconv(p, out_ch, mid_ch, 1)
    c2 = make_rebnconv(p, mid_ch, mid_ch, 1)
    c3 = make_rebnconv(p, mid_ch, mid_ch, 1)
    c4 = make_rebnconv(p, mid_ch, mid_ch, 2)
    c3d = make_rebnconv(p, mid_ch * 2, mid_ch, 1)
    c2d = make_rebnconv(p, mid_ch * 2, mid_ch, 1)
    c1d = make_rebnconv(p, mid_ch * 2, out_ch, 1)

    def f(x):
        hxin = cin(x)
        hx1 = c1(hxin); hx = maxpool2x2_ceil(hx1)
        hx2 = c2(hx);   hx = maxpool2x2_ceil(hx2)
        hx3 = c3(hx)
        hx4 = c4(hx3)
        hx3d = c3d(cat(hx4, hx3)); h = up_like(hx3d, hx2)
        hx2d = c2d(cat(h, hx2));   h = up_like(hx2d, hx1)
        hx1d = c1d(cat(h, hx1))
        return hx1d + hxin
    return f


def make_rsu4f(p, in_ch, mid_ch, out_ch):
    cin = make_rebnconv(p, in_ch, out_ch, 1)
    c1 = make_rebnconv(p, out_ch, mid_ch, 1)
    c2 = make_rebnconv(p, mid_ch, mid_ch, 2)
    c3 = make_rebnconv(p, mid_ch, mid_ch, 4)
    c4 = make_rebnconv(p, mid_ch, mid_ch, 8)
    c3d = make_rebnconv(p, mid_ch * 2, mid_ch, 4)
    c2d = make_rebnconv(p, mid_ch * 2, mid_ch, 2)
    c1d = make_rebnconv(p, mid_ch * 2, out_ch, 1)

    def f(x):
        hxin = cin(x)
        hx1 = c1(hxin)
        hx2 = c2(hx1)
        hx3 = c3(hx2)
        hx4 = c4(hx3)
        hx3d = c3d(cat(hx4, hx3))
        hx2d = c2d(cat(hx3d, hx2))
        hx1d = c1d(cat(hx2d, hx1))
        return hx1d + hxin
    return f


# ----------------------------------------------------------------------------
# ISNetDIS
# ----------------------------------------------------------------------------
def make_isnet_dis(p, in_ch=3, out_ch=1):
    # conv_in: Cin=3, stride 2 -- XLA native conv (K=27 wastes MXU lanes).
    w_in, b_in = p.conv_params(in_ch, 64)

    stage1 = make_rsu7(p, 64, 32, 64)
    stage2 = make_rsu6(p, 64, 32, 128)
    stage3 = make_rsu5(p, 128, 64, 256)
    stage4 = make_rsu4(p, 256, 128, 512)
    stage5 = make_rsu4f(p, 512, 256, 512)
    stage6 = make_rsu4f(p, 512, 256, 512)
    stage5d = make_rsu4f(p, 1024, 256, 512)
    stage4d = make_rsu4(p, 1024, 128, 256)
    stage3d = make_rsu5(p, 512, 64, 128)
    stage2d = make_rsu6(p, 256, 32, 64)
    stage1d = make_rsu7(p, 128, 16, 64)

    # side convs: Cout=1 -> XLA path, not the MXU matmul kernel.
    sides = []
    for c in (64, 64, 128, 256, 512, 512):
        sw, sb = p.conv_params(c, out_ch)
        sides.append((sw, sb))

    def forward(x_nchw):
        x = jnp.transpose(x_nchw, (0, 2, 3, 1))  # NCHW -> NHWC
        hxin = xla_conv3x3(x, w_in, b_in, stride=2)
        # (pool_in output is dead in the original forward; skipped.)
        hx1 = stage1(hxin)
        hx = maxpool2x2_ceil(hx1); hx2 = stage2(hx)
        hx = maxpool2x2_ceil(hx2); hx3 = stage3(hx)
        hx = maxpool2x2_ceil(hx3); hx4 = stage4(hx)
        hx = maxpool2x2_ceil(hx4); hx5 = stage5(hx)
        hx = maxpool2x2_ceil(hx5); hx6 = stage6(hx)

        hx6up = up_like(hx6, hx5)
        hx5d = stage5d(cat(hx6up, hx5)); h = up_like(hx5d, hx4)
        hx4d = stage4d(cat(h, hx4));     h = up_like(hx4d, hx3)
        hx3d = stage3d(cat(h, hx3));     h = up_like(hx3d, hx2)
        hx2d = stage2d(cat(h, hx2));     h = up_like(hx2d, hx1)
        hx1d = stage1d(cat(h, hx1))

        feats = [hx1d, hx2d, hx3d, hx4d, hx5d, hx6]
        ds = []
        for (sw, sb), feat in zip(sides, feats):
            d = xla_conv3x3(feat.astype(jnp.float32), sw, sb, stride=1)
            d = up_like(d, x)
            ds.append(jnp.transpose(d, (0, 3, 1, 2)))        # back to NCHW
        feats_nchw = [jnp.transpose(f_.astype(jnp.float32), (0, 3, 1, 2))
                      for f_ in feats]
        return ds, feats_nchw

    return forward


# ----------------------------------------------------------------------------
if __name__ == "__main__":
    key = jax.random.PRNGKey(0)
    x = jax.random.normal(key, (2, 3, 32, 32), jnp.float32)   # NCHW input

    params = ParamGen(seed=0)
    model = make_isnet_dis(params, in_ch=3, out_ch=1)

    ds, feats = model(x)
    jax.block_until_ready((ds, feats))

    assert len(ds) == 6 and len(feats) == 6
    assert ds[0].shape == (2, 1, 32, 32)
    assert feats[0].shape == (2, 64, 16, 16)
    assert all(bool(jnp.all(jnp.isfinite(d))) for d in ds)
    print("KERNEL_OK")
</pallas_src>

<mosaic_0001>
module attributes {stable_mosaic.version = 11 : i64} {
  func.func @_conv_mm_kernel_single(%arg0: i32, %arg1: i32, %arg2: memref<256x576xbf16, #tpu.memory_space<vmem>>, %arg3: memref<576x128xbf16, #tpu.memory_space<vmem>>, %arg4: memref<1x128xf32, #tpu.memory_space<vmem>>, %arg5: memref<256x128xbf16, #tpu.memory_space<vmem>>) attributes {dimension_semantics = [#tpu.dimension_semantics<parallel>, #tpu.dimension_semantics<parallel>], iteration_bounds = array<i64: 1, 2>, scalar_prefetch = 0 : i64, scratch_operands = 0 : i64, tpu.core_type = #tpu.core_type<tc>, window_params = [{transform_indices = @transform_0, window_bounds = array<i64: 256, 576>}, {transform_indices = @transform_1, window_bounds = array<i64: 576, 128>}, {transform_indices = @transform_2, window_bounds = array<i64: 1, 128>}, {transform_indices = @transform_3, window_bounds = array<i64: 256, 128>}]} {
    %c0 = arith.constant 0 : index
    %c0_0 = arith.constant 0 : index
    %0 = vector.load %arg2[%c0, %c0_0] : memref<256x576xbf16, #tpu.memory_space<vmem>>, vector<256x576xbf16>
    %c0_1 = arith.constant 0 : index
    %c0_2 = arith.constant 0 : index
    %1 = vector.load %arg3[%c0_1, %c0_2] : memref<576x128xbf16, #tpu.memory_space<vmem>>, vector<576x128xbf16>
    %cst = arith.constant dense<0.000000e+00> : vector<256x128xf32>
    %2 = tpu.matmul %0, %1, %cst {dimension_numbers = #tpu.dot_dimension_numbers<[1], [0], [0], [1], [0, 0, 1, 1], [], []>} : vector<256x576xbf16>, vector<576x128xbf16>, vector<256x128xf32> -> vector<256x128xf32>
    %c0_3 = arith.constant 0 : index
    %c0_4 = arith.constant 0 : index
    %3 = vector.load %arg4[%c0_3, %c0_4] : memref<1x128xf32, #tpu.memory_space<vmem>>, vector<1x128xf32>
    %4 = vector.broadcast %3 : vector<1x128xf32> to vector<256x128xf32>
    %5 = arith.addf %2, %4 : vector<256x128xf32>
    %cst_5 = arith.constant 0.000000e+00 : f32
    %6 = vector.broadcast %cst_5 : f32 to vector<256x128xf32>
    %7 = arith.maximumf %5, %6 : vector<256x128xf32>
    %8 = arith.truncf %7 : vector<256x128xf32> to vector<256x128xbf16>
    %c0_6 = arith.constant 0 : index
    %c0_7 = arith.constant 0 : index
    %9 = vector.load %arg5[%c0_6, %c0_7] : memref<256x128xbf16, #tpu.memory_space<vmem>>, vector<256x128xbf16>
    tpu.vector_store %arg5[%c0_6, %c0_7], %8 {strides = array<i32>} : memref<256x128xbf16, #tpu.memory_space<vmem>>, vector<256x128xbf16>,
    return
  }
  func.func @transform_0(%arg0: i32, %arg1: i32) -> (i32, i32) {
    %c0_i32 = arith.constant 0 : i32
    %c0_i32_0 = arith.constant 0 : i32
    return %arg1, %c0_i32 : i32, i32
  }
  func.func @transform_1(%arg0: i32, %arg1: i32) -> (i32, i32) {
    %c0_i32 = arith.constant 0 : i32
    %c0_i32_0 = arith.constant 0 : i32
    return %c0_i32, %arg0 : i32, i32
  }
  func.func @transform_2(%arg0: i32, %arg1: i32) -> (i32, i32) {
    %c0_i32 = arith.constant 0 : i32
    %c0_i32_0 = arith.constant 0 : i32
    return %c0_i32, %arg0 : i32, i32
  }
  func.func @transform_3(%arg0: i32, %arg1: i32) -> (i32, i32) {
    %c0_i32 = arith.constant 0 : i32
    return %arg1, %arg0 : i32, i32
  }
}

</mosaic_0001>

<bundles_post_ra>
// kernel: tpu_custom_call.1
= control target key start
LH: loop header
LB: loop body
LE: loop exit
PB: predicated region body
PF: predicated region fallthrough
CT: control target
= control target key end

     0   :  { %8 = vsyncpa [#allocation3], 0  ;;  %s3145_s0 = inlined_call_operand.vmem [shape: bf16[512,576], index: 0, kind: input, shape index: {}]   ;;  %s3146_s1 = inlined_call_operand.vmem [shape: bf16[576,128], index: 1, kind: input, shape index: {}]   ;;  %s3147_s2 = inlined_call_operand.vmem [shape: f32[1,128], index: 2, kind: input, shape index: {}]   ;;  %s3148_s3 = inlined_call_operand.hbm [shape: bf16[512,128], index: 3, kind: output, shape index: {}]  }
   0x1   :  { %10 = vsyncpa [#allocation3 + $0x1], 0  ;;  %s2607_s12 = smov 0   ;;  %s2609_s13 = smov 0  }
   0x2   :  { %s2611_s14 = smov 0   ;;  %s2613_s15 = smov 0  }
   0x3   :  { %s2615_s16 = smov 0   ;;  %s2617_s17 = smov 0  }
   0x4 LB: > { %s1715_s18 = sadd.s32 4294967295, %s2583_s17   ;;  %s1716_s19 = sadd.s32 4294967294, %s2583_s17   ;;  %s2583_s17 = sphi %s2617_s17, %s16_s17   ;;  %s2579_s16 = sphi %s2615_s16, %s3155_s16   ;;  %s2575_s15 = sphi %s2613_s15, %s3154_s15   ;;  %s2571_s14 = sphi %s2611_s14, %s3153_s14   ;;  %s2567_s13 = sphi %s2609_s13, %s3152_s13   ;;  %s2563_s12 = sphi %s2607_s12, %s3151_s12  }
   0x5   : > { %s25_s20 = sadd.s32 1, %s2579_s16  ;;  %s115_s21 = sadd.s32 1, %s2571_s14 }
   0x6   : > { %p26_p0 = scmp.ge.s32.totalorder %s25_s20, 2  ;;  %p125_p1 = scmp.ne.s32.totalorder %s2571_s14, %s2567_s13 }
   0x7   : > { %p126_p2 = scmp.eq.s32.totalorder %s1715_s18, 1  ;;  %p131_p3 = scmp.ne.s32.totalorder %s2567_s13, %s2563_s12 }
   0x8   : > { %s3157_s20 = smov (%p26_p0, %s25_s20), 0  ;;  %p132_p5 = scmp.eq.s32.totalorder %s1716_s19, 1 }
   0x9   : > { %p2647_p4 = por %p126_p2, %p125_p1  ;;  %s110_s23 = ssub.s32 %s2579_s16, %s3157_s20 }
   0xa   : > { %p1721_p6 = scmp.ge.s32.totalorder %s2583_s17, 1  ;;  %p113_p7 = scmp.eq.s32.totalorder %s110_s23, 0 }
   0xb   : > { %p2654_p8 = por %p132_p5, %p131_p3  ;;  %p173_p9 = scmp.lt.s32.totalorder %s2583_s17, 3 }
   0xc   : > { %s2660_s25 = scalar_select %p113_p7, %s2571_s14, %s115_s21  }
   0xd   : > { %p174_p10 = pnand %p1721_p6, %p173_p9 }
   0xe   : > { %s1723_s5 = sshll.u32 (!%p174_p10), %s2575_s15, 5  ;;  %s202_s19 = sand.u32 (!%p174_p10), 1, %s2567_s13  }
   0xf   : > { %177 = sbr.rel (%p174_p10) target bundleno = 510 (0x1fe), region = 32  ;;  %p206_p11 = scmp.lt.s32.totalorder (!%p174_p10), %s1723_s5, 63 }
  0x10   : > { %s1722_s21 = sshll.u32 (!%p174_p10), %s202_s19, 7  ;;  %s2525_s9 = scalar_lea.hbm (!%p174_p10), %s3148_s3, 256 }
  0x11   : > { %s3000_s23 = scalar_lea.vmem (!%p174_p10), [#allocation2], %s1722_s21 }
  0x12   : > { %s1613_s30 = sshll.u32 (!%p174_p10), %s3000_s23, 4  ;;  %s1614_s30 = int_to_ptr.vmem [resolvable:$true] %s1613_s30 }
  0x14   : > { %v2297_v0 = vld [vmem:[%s3146_s1 + $0x38] sm:$0xff]  ;;  %v2296_v1 = vld [vmem:[%s3146_s1 + $0x30] sm:$0xff]  ;;  %v2295_v2 = vld [vmem:[%s3146_s1 + $0x28] sm:$0xff]  ;;  %s3159_s5 = smov (!%p206_p11, %s1723_s5), 63  ;;  %vm1009_vm0 = vcmask 523264  }
  0x15   : > { %2422 = vmatpush.bf16.msra.mxu1 %v2297_v0  ;;  %2423 = vmatpush.bf16.msra.mxu2 %v2297_v0  ;;  %v2294_v3 = vld [vmem:[%s3146_s1 + $0x20] sm:$0xff]  ;;  %v2293_v4 = vld [vmem:[%s3146_s1 + $0x18] sm:$0xff]  ;;  %v2292_v5 = vld [vmem:[%s3146_s1 + $0x10] sm:$0xff]  ;;  %s2446_s18 = smul.u32 20, %s3159_s5 }
  0x16   : > { %2424 = vmatpush.bf16.msra.mxu3 %v2297_v0  ;;  %1058 = vmatpush.bf16.msra.mxu0 %v2297_v0  ;;  %v2291_v6 = vld [vmem:[%s3146_s1 + $0x8] sm:$0xff]  ;;  %v2290_v7 = vld [vmem:[%s3146_s1] sm:$0xff]  ;;  %v2313_v16 = vld [vmem:[%s3146_s1 + $0xb8] sm:$0xff] }
  0x17   : > { %s2687_s27 = scalar_lea.vmem %s3145_s0, %s2446_s18  ;;  %v2321_v17 = vld [vmem:[%s3146_s1 + $0xf8] sm:$0xff]  ;;  %v2312_v24 = vld [vmem:[%s3146_s1 + $0xb0] sm:$0xff]  ;;  %v2311_v28 = vld [vmem:[%s3146_s1 + $0xa8] sm:$0xff] }
  0x18   : > { %v1807_v8 = vld [vmem:[%s2687_s27 + $0xa0] sm:$0xf]  ;;  %v2232_v9 = vld [vmem:[%s2687_s27 + $0xb0] sm:$0xf0]  ;;  %v2305_v22 = vld [vmem:[%s3146_s1 + $0x78] sm:$0xff] }
  0x19   : > { %2425 = vmatpush.bf16.msra.mxu1 %v2296_v1  ;;  %2426 = vmatpush.bf16.msra.mxu2 %v2296_v1  ;;  %v1887_v10 = vld [vmem:[%s2687_s27 + $0x140] sm:$0xf]  ;;  %v2252_v11 = vld [vmem:[%s2687_s27 + $0x150] sm:$0xf0]  ;;  %v1808_v18 = vor.u32 %v2232_v9, %v1807_v8  ;;  %v2325_v23 = vld [vmem:[%s3146_s1 + $0x118] sm:$0xff] }
  0x1a   : > { %2427 = vmatpush.bf16.msra.mxu3 %v2296_v1  ;;  %1059 = vmatpush.bf16.msra.mxu0 %v2296_v1  ;;  %v1967_v12 = vld [vmem:[%s2687_s27 + $0x1e0] sm:$0xf]  ;;  %v2272_v13 = vld [vmem:[%s2687_s27 + $0x1f0] sm:$0xf0]  ;;  %v1888_v19 = vor.u32 %v2252_v11, %v1887_v10  ;;  %v2319_v29 = vld [vmem:[%s3146_s1 + $0xe8] sm:$0xff] }
  0x1b   : > { %v1727_v14 = vld [vmem:[%s2687_s27] sm:$0xf]  ;;  %v2212_v15 = vld [vmem:[%s2687_s27 + $0x10] sm:$0xf0]  ;;  %v1968_v20 = vor.u32 %v2272_v13, %v1967_v12  ;;  %v2303_v30 = vld [vmem:[%s3146_s1 + $0x68] sm:$0xff] }
  0x1c   : > { %v1728_v21 = vor.u32 %v2212_v15, %v1727_v14  ;;  %v2320_v25 = vld [vmem:[%s3146_s1 + $0xf0] sm:$0xff]  ;;  %v2323_v31 = vld [vmem:[%s3146_s1 + $0x108] sm:$0xff]  ;;  %v2310_v32 = vld [vmem:[%s3146_s1 + $0xa0] sm:$0xff] }
  0x1d   : > { %2428 = vmatpush.bf16.msra.mxu1 %v2295_v2  ;;  %2429 = vmatpush.bf16.msra.mxu2 %v2295_v2  ;;  %v2304_v26 = vld [vmem:[%s3146_s1 + $0x70] sm:$0xff]  ;;  %v2318_v33 = vld [vmem:[%s3146_s1 + $0xe0] sm:$0xff]  ;;  %v1827_v34 = vld [vmem:[%s2687_s27 + $0xc8] sm:$0xf] }
  0x1e   : > { %2430 = vmatpush.bf16.msra.mxu3 %v2295_v2  ;;  %1060 = vmatpush.bf16.msra.mxu0 %v2295_v2  ;;  %v2324_v27 = vld [vmem:[%s3146_s1 + $0x110] sm:$0xff]  ;;  %v2237_v35 = vld [vmem:[%s2687_s27 + $0xd8] sm:$0xf0]  ;;  %v1907_v36 = vld [vmem:[%s2687_s27 + $0x168] sm:$0xf] }
  0x1f   : > { %v2257_v37 = vld [vmem:[%s2687_s27 + $0x178] sm:$0xf0]  ;;  %v1987_v38 = vld [vmem:[%s2687_s27 + $0x208] sm:$0xf]  ;;  %v2302_v42 = vld [vmem:[%s3146_s1 + $0x60] sm:$0xff]  ;;  %v1828_v45 = vor.u32 %v2237_v35, %v1827_v34 }
  0x20   : > { %v2277_v39 = vld [vmem:[%s2687_s27 + $0x218] sm:$0xf0]  ;;  %v1747_v40 = vld [vmem:[%s2687_s27 + $0x28] sm:$0xf]  ;;  %v1908_v46 = vor.u32 %v2257_v37, %v1907_v36  ;;  %v2308_v50 = vld [vmem:[%s3146_s1 + $0x90] sm:$0xff] }
  0x21   : > { %2431 = vmatpush.bf16.msra.mxu1 %v2294_v3  ;;  %2432 = vmatpush.bf16.msra.mxu2 %v2294_v3  ;;  %v2217_v41 = vld [vmem:[%s2687_s27 + $0x38] sm:$0xf0]  ;;  %v1988_v47 = vor.u32 %v2277_v39, %v1987_v38  ;;  %v2316_v51 = vld [vmem:[%s3146_s1 + $0xd0] sm:$0xff]  ;;  %v2322_v53 = vld [vmem:[%s3146_s1 + $0x100] sm:$0xff] }
  0x22   : > { %2433 = vmatpush.bf16.msra.mxu3 %v2294_v3  ;;  %1061 = vmatpush.bf16.msra.mxu0 %v2294_v3  ;;  %v2309_v43 = vld [vmem:[%s3146_s1 + $0x98] sm:$0xff]  ;;  %v1748_v48 = vor.u32 %v2217_v41, %v1747_v40  ;;  %v2300_v52 = vld [vmem:[%s3146_s1 + $0x50] sm:$0xff]  ;;  %v2307_v54 = vld [vmem:[%s3146_s1 + $0x88] sm:$0xff] }
  0x23   : > { %v2317_v44 = vld [vmem:[%s3146_s1 + $0xd8] sm:$0xff]  ;;  %v2315_v55 = vld [vmem:[%s3146_s1 + $0xc8] sm:$0xff]  ;;  %v2306_v57 = vld [vmem:[%s3146_s1 + $0x80] sm:$0xff] }
  0x24   : > { %v2301_v49 = vld [vmem:[%s3146_s1 + $0x58] sm:$0xff]  ;;  %v2299_v56 = vld [vmem:[%s3146_s1 + $0x48] sm:$0xff]  ;;  %v2314_v58 = vld [vmem:[%s3146_s1 + $0xc0] sm:$0xff] }
  0x25   : > { %2434 = vmatpush.bf16.msra.mxu1 %v2293_v4  ;;  %2435 = vmatpush.bf16.msra.mxu2 %v2293_v4  ;;  %v1847_v59 = vld [vmem:[%s2687_s27 + $0xf0] sm:$0xf]  ;;  %v2242_v60 = vld [vmem:[%s2687_s27 + $0x100] sm:$0xf0]  ;;  %v1867_v8 = vld [vmem:[%s2687_s27 + $0x118] sm:$0xf] }
  0x26   : > { %2436 = vmatpush.bf16.msra.mxu3 %v2293_v4  ;;  %1062 = vmatpush.bf16.msra.mxu0 %v2293_v4  ;;  %v1927_v61 = vld [vmem:[%s2687_s27 + $0x190] sm:$0xf]  ;;  %v2262_v62 = vld [vmem:[%s2687_s27 + $0x1a0] sm:$0xf0]  ;;  %v1848_v4 = vor.u32 %v2242_v60, %v1847_v59  ;;  %v2247_v9 = vld [vmem:[%s2687_s27 + $0x128] sm:$0xf0] }
  0x27   : > { %v2007_v63 = vld [vmem:[%s2687_s27 + $0x230] sm:$0xf]  ;;  %v2282_v0 = vld [vmem:[%s2687_s27 + $0x240] sm:$0xf0]  ;;  %v1947_v10 = vld [vmem:[%s2687_s27 + $0x1b8] sm:$0xf] }
  0x28   : > { %v1767_v1 = vld [vmem:[%s2687_s27 + $0x50] sm:$0xf]  ;;  %v2222_v2 = vld [vmem:[%s2687_s27 + $0x60] sm:$0xf0]  ;;  %v2267_v11 = vld [vmem:[%s2687_s27 + $0x1c8] sm:$0xf0] }
  0x29   : > { %2437 = vmatpush.bf16.msra.mxu1 %v2292_v5  ;;  %2438 = vmatpush.bf16.msra.mxu2 %v2292_v5  ;;  %v2298_v3 = vld [vmem:[%s3146_s1 + $0x40] sm:$0xff]  ;;  %v2027_v12 = vld [vmem:[%s2687_s27 + $0x258] sm:$0xf]  ;;  %v2287_v13 = vld [vmem:[%s2687_s27 + $0x268] sm:$0xf0] }
  0x2a   : > { %2439 = vmatpush.bf16.msra.mxu3 %v2292_v5  ;;  %1063 = vmatpush.bf16.msra.mxu0 %v2292_v5  ;;  %v1928_v5 = vor.u32 %v2262_v62, %v1927_v61  ;;  %v1787_v14 = vld [vmem:[%s2687_s27 + $0x78] sm:$0xf]  ;;  %v2227_v15 = vld [vmem:[%s2687_s27 + $0x88] sm:$0xf0]  ;;  %v1755_v34 = vld [vmem:[%s2687_s27 + $0x30] sm:$0xf] }
  0x2b   : > { %v2218_v35 = vld [vmem:[%s2687_s27 + $0x40] sm:$0xf0]  ;;  %v2216_v36 = vld [vmem:[%s2687_s27 + $0x34] sm:$0xf]  ;;  %v1757_v37 = vld [vmem:[%s2687_s27 + $0x44] sm:$0xf0] }
  0x2c   : > { %v1763_v38 = vld [vmem:[%s2687_s27 + $0x38] sm:$0xf]  ;;  %v2219_v39 = vld [vmem:[%s2687_s27 + $0x48] sm:$0xf0]  ;;  %v1756_v41 = vor.u32 %v2218_v35, %v1755_v34  ;;  %v2228_v59 = vld [vmem:[%s2687_s27 + $0x90] sm:$0xf0] }
  0x2d   : > { %2440 = vmatpush.bf16.msra.mxu1 %v2291_v6  ;;  %2441 = vmatpush.bf16.msra.mxu2 %v2291_v6  ;;  %v2226_v60 = vld [vmem:[%s2687_s27 + $0x84] sm:$0xf]  ;;  %v1797_v61 = vld [vmem:[%s2687_s27 + $0x94] sm:$0xf0]  ;;  %v1803_v62 = vld [vmem:[%s2687_s27 + $0x88] sm:$0xf] }
  0x2e   : > { %2442 = vmatpush.bf16.msra.mxu3 %v2291_v6  ;;  %1064 = vmatpush.bf16.msra.mxu0 %v2291_v6  ;;  %v2008_v6 = vor.u32 %v2282_v0, %v2007_v63  ;;  %v2229_v63 = vld [vmem:[%s2687_s27 + $0x98] sm:$0xf0]  ;;  %v2239_v34 = vld [vmem:[%s2687_s27 + $0xe8] sm:$0xf0] }
  0x31   : > { %2443 = vmatpush.bf16.msra.mxu1 %v2290_v7  ;;  %2444 = vmatpush.bf16.msra.mxu2 %v2290_v7 }
  0x32   : > { %2445 = vmatpush.bf16.msra.mxu3 %v2290_v7  ;;  %1065 = vmatpush.bf16.msra.mxu0 %v2290_v7  ;;  %v1768_v7 = vor.u32 %v2222_v2, %v1767_v1  ;;  %v1800_v2 = vor.u32 %v2226_v60, %v1797_v61  ;;  %v2244_v60 = vld [vmem:[%s2687_s27 + $0x110] sm:$0xf0] }
  0x34   : > { %1086 = vmatmul.bf16.vlgmr.msra.gmra.mxu1 %v1808_v18  ;;  %1106 = vmatmul.bf16.vlgmr.msra.gmra.mxu2 %v1888_v19  ;;  %v2028_v18 = vor.u32 %v2287_v13, %v2027_v12  ;;  %v1788_v19 = vor.u32 %v2227_v15, %v1787_v14  ;;  %v2234_v12 = vld [vmem:[%s2687_s27 + $0xc0] sm:$0xf0] }
  0x35   : > { %1236 = vmatpush.bf16.msrb.mxu2 %v2313_v16  ;;  %1126 = vmatmul.bf16.vlgmr.msra.gmra.mxu3 %v1968_v20  ;;  %v1868_v16 = vor.u32 %v2247_v9, %v1867_v8  ;;  %v2210_v20 = vld [vmem:[%s2687_s27 + $0x4] sm:$0xf]  ;;  %v2233_v8 = vld [vmem:[%s2687_s27 + $0xb8] sm:$0xf0]  ;;  %v2231_v9 = vld [vmem:[%s2687_s27 + $0xac] sm:$0xf] }
  0x36   : > { %1325 = vmatpush.bf16.msrb.mxu3 %v2321_v17  ;;  %1066 = vmatmul.bf16.vlgmr.msra.gmra.mxu0 %v1728_v21  ;;  %v1948_v17 = vor.u32 %v2267_v11, %v1947_v10  ;;  %v1729_v21 = vld [vmem:[%s2687_s27 + $0x14] sm:$0xf0]  ;;  %v1817_v10 = vld [vmem:[%s2687_s27 + $0xbc] sm:$0xf0]  ;;  %v1823_v11 = vld [vmem:[%s2687_s27 + $0xb0] sm:$0xf] }
  0x37   : > { %1147 = vmatpush.bf16.msrb.mxu1 %v2305_v22  ;;  %1418 = vmatpush.bf16.msrb.mxu0 %v2325_v23  ;;  %v1735_v22 = vld [vmem:[%s2687_s27 + $0x8] sm:$0xf]  ;;  %v2213_v23 = vld [vmem:[%s2687_s27 + $0x18] sm:$0xf0] }
  0x39   : > { %1237 = vmatpush.bf16.msrb.mxu2 %v2312_v24  ;;  %v2211_v24 = vld [vmem:[%s2687_s27 + $0xc] sm:$0xf] }
  0x3a   : > { %1326 = vmatpush.bf16.msrb.mxu3 %v2320_v25  ;;  %v1737_v25 = vld [vmem:[%s2687_s27 + $0x1c] sm:$0xf0] }
  0x3b   : > { %1148 = vmatpush.bf16.msrb.mxu1 %v2304_v26  ;;  %1419 = vmatpush.bf16.msrb.mxu0 %v2324_v27  ;;  %v1743_v26 = vld [vmem:[%s2687_s27 + $0x10] sm:$0xf]  ;;  %v2214_v27 = vld [vmem:[%s2687_s27 + $0x20] sm:$0xf0] }
  0x3d   : > { %1238 = vmatpush.bf16.msrb.mxu2 %v2311_v28  ;;  %v1732_v28 = vor.u32 %v2210_v20, %v1729_v21 }
  0x3e   : > { %1327 = vmatpush.bf16.msrb.mxu3 %v2319_v29  ;;  %v1736_v29 = vor.u32 %v2213_v23, %v1735_v22 }
  0x3f   : > { %1149 = vmatpush.bf16.msrb.mxu1 %v2303_v30  ;;  %1420 = vmatpush.bf16.msrb.mxu0 %v2323_v31  ;;  %v1740_v30 = vor.u32 %v2211_v24, %v1737_v25  ;;  %v1744_v31 = vor.u32 %v2214_v27, %v1743_v26  ;;  %v2235_v27 = vld [vmem:[%s2687_s27 + $0xcc] sm:$0xf] }
  0x41   : > { %1239 = vmatpush.bf16.msrb.mxu2 %v2310_v32  ;;  %v2215_v32 = vld [vmem:[%s2687_s27 + $0x2c] sm:$0xf] }
  0x42   : > { %1328 = vmatpush.bf16.msrb.mxu3 %v2318_v33  ;;  %v1749_v33 = vld [vmem:[%s2687_s27 + $0x3c] sm:$0xf0] }
  0x43   : > { %1150 = vmatpush.bf16.msrb.mxu1 %v2302_v42  ;;  %1421 = vmatpush.bf16.msrb.mxu0 %v2322_v53  ;;  %v1752_v40 = vor.u32 %v2215_v32, %v1749_v33  ;;  %v1760_v42 = vor.u32 %v2216_v36, %v1757_v37  ;;  %v1837_v32 = vld [vmem:[%s2687_s27 + $0xe4] sm:$0xf0]  ;;  %v1843_v33 = vld [vmem:[%s2687_s27 + $0xd8] sm:$0xf] }
  0x44   : > { %1091 = vmatmul.bf16.gmra.mxu1 %v1828_v45  ;;  %1111 = vmatmul.bf16.gmra.mxu2 %v1908_v46  ;;  %v1769_v45 = vld [vmem:[%s2687_s27 + $0x64] sm:$0xf0]  ;;  %v1775_v46 = vld [vmem:[%s2687_s27 + $0x58] sm:$0xf] }
  0x45   : > { %1240 = vmatpush.bf16.msrb.mxu2 %v2309_v43  ;;  %1131 = vmatmul.bf16.gmra.mxu3 %v1988_v47  ;;  %v1764_v43 = vor.u32 %v2219_v39, %v1763_v38  ;;  %v2223_v47 = vld [vmem:[%s2687_s27 + $0x68] sm:$0xf0] }
  0x46   : > { %1329 = vmatpush.bf16.msrb.mxu3 %v2317_v44  ;;  %1071 = vmatmul.bf16.gmra.mxu0 %v1748_v48  ;;  %v2220_v44 = vld [vmem:[%s2687_s27 + $0x54] sm:$0xf]  ;;  %v2221_v48 = vld [vmem:[%s2687_s27 + $0x5c] sm:$0xf]  ;;  %v1776_v53 = vor.u32 %v2223_v47, %v1775_v46 }
  0x47   : > { %1151 = vmatpush.bf16.msrb.mxu1 %v2301_v49  ;;  %v1777_v49 = vld [vmem:[%s2687_s27 + $0x6c] sm:$0xf0] }
  0x49   : > { %1241 = vmatpush.bf16.msrb.mxu2 %v2308_v50  ;;  %v1783_v50 = vld [vmem:[%s2687_s27 + $0x60] sm:$0xf] }
  0x4a   : > { %1330 = vmatpush.bf16.msrb.mxu3 %v2316_v51  ;;  %v2224_v51 = vld [vmem:[%s2687_s27 + $0x70] sm:$0xf0] }
  0x4b   : > { %1152 = vmatpush.bf16.msrb.mxu1 %v2300_v52  ;;  %v1772_v52 = vor.u32 %v2220_v44, %v1769_v45 }
  0x4d   : > { %1242 = vmatpush.bf16.msrb.mxu2 %v2307_v54  ;;  %v1780_v54 = vor.u32 %v2221_v48, %v1777_v49 }
  0x4e   : > { %1331 = vmatpush.bf16.msrb.mxu3 %v2315_v55  ;;  %v1784_v55 = vor.u32 %v2224_v51, %v1783_v50 }
  0x4f   : > { %1153 = vmatpush.bf16.msrb.mxu1 %v2299_v56  ;;  %v2225_v56 = vld [vmem:[%s2687_s27 + $0x7c] sm:$0xf] }
  0x51   : > { %1243 = vmatpush.bf16.msrb.mxu2 %v2306_v57  ;;  %v1789_v57 = vld [vmem:[%s2687_s27 + $0x8c] sm:$0xf0] }
  0x52   : > { %1332 = vmatpush.bf16.msrb.mxu3 %v2314_v58  ;;  %v1795_v58 = vld [vmem:[%s2687_s27 + $0x80] sm:$0xf]  ;;  %v1792_v0 = vor.u32 %v2225_v56, %v1789_v57  ;;  %v2243_v56 = vld [vmem:[%s2687_s27 + $0x108] sm:$0xf0]  ;;  %v2241_v57 = vld [vmem:[%s2687_s27 + $0xfc] sm:$0xf] }
  0x53   : > { %1154 = vmatpush.bf16.msrb.mxu1 %v2298_v3  ;;  %v1796_v1 = vor.u32 %v2228_v59, %v1795_v58  ;;  %v1804_v3 = vor.u32 %v2229_v63, %v1803_v62  ;;  %v1857_v58 = vld [vmem:[%s2687_s27 + $0x10c] sm:$0xf0]  ;;  %v1863_v59 = vld [vmem:[%s2687_s27 + $0x100] sm:$0xf] }
  0x54   : > { %1096 = vmatmul.bf16.gmra.mxu1 %v1848_v4  ;;  %1116 = vmatmul.bf16.gmra.mxu2 %v1928_v5  ;;  %v2847_v4 = vld [vmem:[%s3147_s2] ss:$0 sm:$0xff]  ;;  %v2230_v5 = vld [vmem:[%s2687_s27 + $0xa4] sm:$0xf] }
  0x55   : > { %1136 = vmatmul.bf16.gmra.mxu3 %v2008_v6  ;;  %v1809_v6 = vld [vmem:[%s2687_s27 + $0xb4] sm:$0xf0] }
  0x56   : > { %1076 = vmatmul.bf16.gmra.mxu0 %v1768_v7  ;;  %v1815_v7 = vld [vmem:[%s2687_s27 + $0xa8] sm:$0xf]  ;;  %v1812_v13 = vor.u32 %v2230_v5, %v1809_v6  ;;  %v1860_v5 = vor.u32 %v2241_v57, %v1857_v58  ;;  %v1864_v6 = vor.u32 %v2244_v60, %v1863_v59  ;;  %v1889_v57 = vld [vmem:[%s2687_s27 + $0x154] sm:$0xf0]  ;;  %v2253_v59 = vld [vmem:[%s2687_s27 + $0x158] sm:$0xf0] }
  0x57   : > { %v1816_v14 = vor.u32 %v2233_v8, %v1815_v7  ;;  %v1895_v58 = vld [vmem:[%s2687_s27 + $0x148] sm:$0xf]  ;;  %v2251_v60 = vld [vmem:[%s2687_s27 + $0x14c] sm:$0xf] }
  0x64   : > { %1101 = vmatmul.bf16.gmra.mxu1 %v1868_v16  ;;  %1121 = vmatmul.bf16.gmra.mxu2 %v1948_v17  ;;  %v1820_v16 = vor.u32 %v2231_v9, %v1817_v10  ;;  %v1824_v17 = vor.u32 %v2234_v12, %v1823_v11 }
  0x65   : > { %1141 = vmatmul.bf16.gmra.mxu3 %v2028_v18 }
  0x66   : > { %1081 = vmatmul.bf16.gmra.mxu0 %v1788_v19 }
  0x74   : > { %1155 = vmatmul.bf16.vlgmr.msrb.gmra.mxu1 %v1732_v28  ;;  %1244 = vmatmul.bf16.vlgmr.msrb.gmra.mxu2 %v1736_v29  ;;  %v1829_v28 = vld [vmem:[%s2687_s27 + $0xdc] sm:$0xf0]  ;;  %v1835_v29 = vld [vmem:[%s2687_s27 + $0xd0] sm:$0xf] }
  0x75   : > { %1333 = vmatmul.bf16.vlgmr.msrb.gmra.mxu3 %v1740_v30  ;;  %v2238_v30 = vld [vmem:[%s2687_s27 + $0xe0] sm:$0xf0]  ;;  %v1832_v38 = vor.u32 %v2235_v27, %v1829_v28  ;;  %v1877_v27 = vld [vmem:[%s2687_s27 + $0x134] sm:$0xf0]  ;;  %v1883_v28 = vld [vmem:[%s2687_s27 + $0x128] sm:$0xf] }
  0x76   : > { %2189 = vmatmul.msk.bf16.vlgmr.msrb.gmra.mxu0 %vm1009_vm0, %v1744_v31  ;;  %v2236_v31 = vld [vmem:[%s2687_s27 + $0xd4] sm:$0xf]  ;;  %v1836_v39 = vor.u32 %v2238_v30, %v1835_v29  ;;  %v2249_v29 = vld [vmem:[%s2687_s27 + $0x138] sm:$0xf0] }
  0x84   : > { %1160 = vmatmul.bf16.gmra.mxu1 %v1752_v40  ;;  %1249 = vmatmul.bf16.gmra.mxu2 %v1756_v41 }
  0x85   : > { %1338 = vmatmul.bf16.gmra.mxu3 %v1760_v42  ;;  %v1840_v42 = vor.u32 %v2236_v31, %v1837_v32 }
  0x86   : > { %2190 = vmatmul.msk.bf16.gmra.mxu0 %vm1009_vm0, %v1764_v43  ;;  %v1844_v43 = vor.u32 %v2239_v34, %v1843_v33 }
  0x94   : > { %1165 = vmatmul.bf16.gmra.mxu1 %v1772_v52  ;;  %1254 = vmatmul.bf16.gmra.mxu2 %v1776_v53  ;;  %v2240_v53 = vld [vmem:[%s2687_s27 + $0xf4] sm:$0xf] }
  0x95   : > { %1343 = vmatmul.bf16.gmra.mxu3 %v1780_v54  ;;  %v1849_v54 = vld [vmem:[%s2687_s27 + $0x104] sm:$0xf0] }
  0x96   : > { %2191 = vmatmul.msk.bf16.gmra.mxu0 %vm1009_vm0, %v1784_v55  ;;  %v1855_v55 = vld [vmem:[%s2687_s27 + $0xf8] sm:$0xf] }
  0xa4   : > { %1170 = vmatmul.bf16.gmra.mxu1 %v1792_v0  ;;  %1259 = vmatmul.bf16.gmra.mxu2 %v1796_v1  ;;  %v1852_v0 = vor.u32 %v2240_v53, %v1849_v54  ;;  %v1856_v1 = vor.u32 %v2243_v56, %v1855_v55  ;;  %v2250_v56 = vld [vmem:[%s2687_s27 + $0x144] sm:$0xf] }
  0xa5   : > { %1348 = vmatmul.bf16.gmra.mxu3 %v1800_v2 }
  0xa6   : > { %2192 = vmatmul.msk.bf16.gmra.mxu0 %vm1009_vm0, %v1804_v3 }
  0xb1   : > { %v1087_v15 = vpop.f32.mrf.mxu1 }
  0xb2   : > { %v2858_v18 = vadd.f32 %v2847_v4, %v1087_v15 }
  0xb3   : > { %v2860_v19 = vpop.f32.mrf.mxu0 }
  0xb4   : > { %1175 = vmatmul.bf16.gmra.mxu1 %v1812_v13  ;;  %1264 = vmatmul.bf16.gmra.mxu2 %v1816_v14 }
  0xb5   : > { %1353 = vmatmul.bf16.gmra.mxu3 %v1820_v16  ;;  %v2245_v16 = vld [vmem:[%s2687_s27 + $0x11c] sm:$0xf] }
  0xb6   : > { %2193 = vmatmul.msk.bf16.gmra.mxu0 %vm1009_vm0, %v1824_v17  ;;  %v1869_v17 = vld [vmem:[%s2687_s27 + $0x12c] sm:$0xf0] }
  0xb7   : > { %v1107_v20 = vpop.f32.mrf.mxu2  ;;  %v1872_v33 = vor.u32 %v2245_v16, %v1869_v17 }
  0xb8   : > { %v2864_v21 = vadd.f32 %v2847_v4, %v1107_v20  ;;  %v1127_v22 = vpop.f32.mrf.mxu3  ;;  %v1875_v20 = vld [vmem:[%s2687_s27 + $0x120] sm:$0xf] }
  0xb9   : > { %v2867_v23 = vadd.f32 %v2847_v4, %v1127_v22  ;;  %v1089_v24 = vpop.f32.mrf.mxu1  ;;  %v2248_v22 = vld [vmem:[%s2687_s27 + $0x130] sm:$0xf0] }
  0xba   : > { %v2870_v25 = vadd.f32 %v2847_v4, %v1089_v24  ;;  %v2246_v24 = vld [vmem:[%s2687_s27 + $0x124] sm:$0xf]  ;;  %v1876_v34 = vor.u32 %v2248_v22, %v1875_v20  ;;  %v1068_v22 = vadd.f32 %v2847_v4, %v2860_v19  ;;  %v1917_v19 = vld [vmem:[%s2687_s27 + $0x184] sm:$0xf0] }
  0xbb   : > { %v2872_v26 = vpop.f32.mrf.mxu0 }
  0xbf   : > { %v1109_v35 = vpop.f32.mrf.mxu2 }
  0xc0   : > { %v2883_v36 = vadd.f32 %v2847_v4, %v1109_v35  ;;  %v1129_v37 = vpop.f32.mrf.mxu3 }
  0xc1   : > { %v2886_v40 = vadd.f32 %v2847_v4, %v1129_v37  ;;  %v1092_v41 = vpop.f32.mrf.mxu1 }
  0xc2   : > { %v2889_v44 = vadd.f32 %v2847_v4, %v1092_v41 }
  0xc3   : > { %v2891_v45 = vpop.f32.mrf.mxu0 }
  0xc4   : > { %1180 = vmatmul.bf16.gmra.mxu1 %v1832_v38  ;;  %1269 = vmatmul.bf16.gmra.mxu2 %v1836_v39  ;;  %v1880_v38 = vor.u32 %v2246_v24, %v1877_v27  ;;  %v1884_v39 = vor.u32 %v2249_v29, %v1883_v28 }
  0xc5   : > { %1358 = vmatmul.bf16.gmra.mxu3 %v1840_v42 }
  0xc6   : > { %2194 = vmatmul.msk.bf16.gmra.mxu0 %vm1009_vm0, %v1844_v43 }
  0xc7   : > { %v1112_v46 = vpop.f32.mrf.mxu2 }
  0xc8   : > { %v2895_v47 = vadd.f32 %v2847_v4, %v1112_v46  ;;  %v1132_v48 = vpop.f32.mrf.mxu3 }
  0xc9   : > { %v2898_v49 = vadd.f32 %v2847_v4, %v1132_v48  ;;  %v1094_v50 = vpop.f32.mrf.mxu1 }
  0xca   : > { %v2901_v51 = vadd.f32 %v2847_v4, %v1094_v50 }
  0xcb   : > { %v2903_v52 = vpop.f32.mrf.mxu0 }
  0xcf   : > { %v1114_v61 = vpop.f32.mrf.mxu2 }
  0xd0   : > { %v2914_v62 = vadd.f32 %v2847_v4, %v1114_v61  ;;  %v1134_v63 = vpop.f32.mrf.mxu3  ;;  %v1897_v61 = vld [vmem:[%s2687_s27 + $0x15c] sm:$0xf0] }
  0xd1   : > { %v2917_v2 = vadd.f32 %v2847_v4, %v1134_v63  ;;  %v1097_v3 = vpop.f32.mrf.mxu1  ;;  %v1903_v63 = vld [vmem:[%s2687_s27 + $0x150] sm:$0xf]  ;;  %v1900_v16 = vor.u32 %v2251_v60, %v1897_v61 }
  0xd2   : > { %v2920_v7 = vadd.f32 %v2847_v4, %v1097_v3 }
  0xd3   : > { %v2922_v8 = vpop.f32.mrf.mxu0 }
  0xd4   : > { %1185 = vmatmul.bf16.gmra.mxu1 %v1852_v0  ;;  %1274 = vmatmul.bf16.gmra.mxu2 %v1856_v1  ;;  %v2254_v0 = vld [vmem:[%s2687_s27 + $0x160] sm:$0xf0] }
  0xd5   : > { %1363 = vmatmul.bf16.gmra.mxu3 %v1860_v5  ;;  %v1904_v17 = vor.u32 %v2254_v0, %v1903_v63 }
  0xd6   : > { %2195 = vmatmul.msk.bf16.gmra.mxu0 %vm1009_vm0, %v1864_v6  ;;  %v1892_v6 = vor.u32 %v2250_v56, %v1889_v57  ;;  %v1923_v56 = vld [vmem:[%s2687_s27 + $0x178] sm:$0xf]  ;;  %v2259_v57 = vld [vmem:[%s2687_s27 + $0x188] sm:$0xf0] }
  0xd7   : > { %v1117_v9 = vpop.f32.mrf.mxu2 }
  0xd8   : > { %v2926_v10 = vadd.f32 %v2847_v4, %v1117_v9  ;;  %v1137_v11 = vpop.f32.mrf.mxu3  ;;  %v1896_v9 = vor.u32 %v2253_v59, %v1895_v58 }
  0xd9   : > { %v2929_v12 = vadd.f32 %v2847_v4, %v1137_v11  ;;  %v1099_v13 = vpop.f32.mrf.mxu1 }
  0xda   : > { %v2932_v14 = vadd.f32 %v2847_v4, %v1099_v13 }
  0xdb   : > { %v2934_v15 = vpop.f32.mrf.mxu0 }
  0xdf   : > { %v1119_v30 = vpop.f32.mrf.mxu2 }
  0xe0   : > { %v2945_v31 = vadd.f32 %v2847_v4, %v1119_v30  ;;  %v1139_v32 = vpop.f32.mrf.mxu3 }
  0xe1   : > { %v2948_v35 = vadd.f32 %v2847_v4, %v1139_v32  ;;  %v1102_v37 = vpop.f32.mrf.mxu1 }
  0xe2   : > { %v2951_v41 = vadd.f32 %v2847_v4, %v1102_v37  ;;  %v1909_v37 = vld [vmem:[%s2687_s27 + $0x17c] sm:$0xf0] }
  0xe3   : > { %v2953_v42 = vpop.f32.mrf.mxu0 }
  0xe4   : > { %1190 = vmatmul.bf16.gmra.mxu1 %v1872_v33  ;;  %1279 = vmatmul.bf16.gmra.mxu2 %v1876_v34  ;;  %v1070_v33 = vadd.f32 %v2847_v4, %v2872_v26  ;;  %v2255_v34 = vld [vmem:[%s2687_s27 + $0x16c] sm:$0xf] }
  0xe5   : > { %1368 = vmatmul.bf16.gmra.mxu3 %v1880_v38  ;;  %v1915_v38 = vld [vmem:[%s2687_s27 + $0x170] sm:$0xf]  ;;  %v1912_v61 = vor.u32 %v2255_v34, %v1909_v37  ;;  %v1929_v34 = vld [vmem:[%s2687_s27 + $0x1a4] sm:$0xf0]  ;;  %v1935_v37 = vld [vmem:[%s2687_s27 + $0x198] sm:$0xf] }
  0xe6   : > { %2196 = vmatmul.msk.bf16.gmra.mxu0 %vm1009_vm0, %v1884_v39  ;;  %v2258_v39 = vld [vmem:[%s2687_s27 + $0x180] sm:$0xf0] }
  0xe7   : > { %v1122_v43 = vpop.f32.mrf.mxu2  ;;  %v1916_v63 = vor.u32 %v2258_v39, %v1915_v38  ;;  %v2263_v38 = vld [vmem:[%s2687_s27 + $0x1a8] sm:$0xf0]  ;;  %v2261_v39 = vld [vmem:[%s2687_s27 + $0x19c] sm:$0xf] }
  0xe8   : > { %v2957_v46 = vadd.f32 %v2847_v4, %v1122_v43  ;;  %v1142_v48 = vpop.f32.mrf.mxu3  ;;  %v2256_v43 = vld [vmem:[%s2687_s27 + $0x174] sm:$0xf] }
  0xe9   : > { %v2960_v50 = vadd.f32 %v2847_v4, %v1142_v48  ;;  %v1104_v53 = vpop.f32.mrf.mxu1  ;;  %v1920_v26 = vor.u32 %v2256_v43, %v1917_v19  ;;  %v1943_v19 = vld [vmem:[%s2687_s27 + $0x1a0] sm:$0xf] }
  0xea   : > { %v2963_v54 = vadd.f32 %v2847_v4, %v1104_v53 }
  0xeb   : > { %v2965_v55 = vpop.f32.mrf.mxu0 }
  0xef   : > { %v1124_v1 = vpop.f32.mrf.mxu2 }
  0xf0   : > { %v2976_v3 = vadd.f32 %v2847_v4, %v1124_v1  ;;  %v1144_v5 = vpop.f32.mrf.mxu3  ;;  %v1924_v1 = vor.u32 %v2259_v57, %v1923_v56  ;;  %v2264_v56 = vld [vmem:[%s2687_s27 + $0x1b0] sm:$0xf0] }
  0xf1   : > { %v2979_v11 = vadd.f32 %v2847_v4, %v1144_v5  ;;  %v1156_v13 = vpop.f32.mrf.mxu1 }
  0xf2   : > { %v1157_v27 = vadd.f32 %v1156_v13, %v1068_v22 }
  0xf3   : > { %v1423_v20 = vpop.f32.mrf.mxu0 }
  0xf4   : > { %1195 = vmatmul.bf16.gmra.mxu1 %v1892_v6  ;;  %1284 = vmatmul.bf16.gmra.mxu2 %v1896_v9 }
  0xf5   : > { %1373 = vmatmul.bf16.gmra.mxu3 %v1900_v16  ;;  %v1073_v16 = vadd.f32 %v2847_v4, %v2891_v45  ;;  %v1075_v45 = vadd.f32 %v2847_v4, %v2903_v52 }
  0xf6   : > { %2197 = vmatmul.msk.bf16.gmra.mxu0 %vm1009_vm0, %v1904_v17 }
  0xf7   : > { %v1245_v24 = vpop.f32.mrf.mxu2 }
  0xf8   : > { %v1334_v28 = vpop.f32.mrf.mxu3  ;;  %v1246_v30 = vadd.f32 %v1245_v24, %v1157_v27 }
  0xf9   : > { %v1158_v29 = vpop.f32.mrf.mxu1 }
  0xfa   : > { %v1335_v48 = vadd.f32 %v1334_v28, %v1246_v30  ;;  %v1159_v53 = vadd.f32 %v1158_v29, %v1070_v33  ;;  %v2260_v33 = vld [vmem:[%s2687_s27 + $0x194] sm:$0xf] }
  0xfb   : > { %v1425_v32 = vpop.f32.mrf.mxu0 }
  0xfc   : > { %v1424_v5 = vadd.f32 %v1423_v20, %v1335_v48 }
  0xfe   : > { %v1503_v17 = vmax.f32 %v1424_v5, 0.0 }
  0xff   : > { %v1247_v58 = vpop.f32.mrf.mxu2 }
 0x100   : > { %v1248_v59 = vadd.f32 %v1247_v58, %v1159_v53  ;;  %v1336_v60 = vpop.f32.mrf.mxu3  ;;  %v1937_v53 = vld [vmem:[%s2687_s27 + $0x1ac] sm:$0xf0] }
 0x101   : > { %v1161_v0 = vpop.f32.mrf.mxu1 }
 0x102   : > { %v1337_v6 = vadd.f32 %v1336_v60, %v1248_v59  ;;  %v1162_v27 = vadd.f32 %v1161_v0, %v1073_v16  ;;  %v1932_v60 = vor.u32 %v2260_v33, %v1929_v34  ;;  %v1940_v0 = vor.u32 %v2261_v39, %v1937_v53  ;;  %v2268_v33 = vld [vmem:[%s2687_s27 + $0x1d0] sm:$0xf0]  ;;  %v2266_v34 = vld [vmem:[%s2687_s27 + $0x1c4] sm:$0xf]  ;;  %v1957_v39 = vld [vmem:[%s2687_s27 + $0x1d4] sm:$0xf0] }
 0x103   : > { %v1428_v9 = vpop.f32.mrf.mxu0 }
 0x104   : > { %v1426_v13 = vadd.f32 %v1425_v32, %v1337_v6  ;;  %1200 = vmatmul.bf16.gmra.mxu1 %v1912_v61  ;;  %1289 = vmatmul.bf16.gmra.mxu2 %v1916_v63  ;;  %v1936_v61 = vor.u32 %v2263_v38, %v1935_v37 }
 0x105   : > { %1378 = vmatmul.bf16.gmra.mxu3 %v1920_v26  ;;  %v1944_v26 = vor.u32 %v2264_v56, %v1943_v19 }
 0x106   : > { %2198 = vmatmul.msk.bf16.gmra.mxu0 %vm1009_vm0, %v1924_v1  ;;  %v1504_v20 = vmax.f32 %v1426_v13, 0.0  ;;  %v1078_v13 = vadd.f32 %v2847_v4, %v2922_v8  ;;  %v1955_v8 = vld [vmem:[%s2687_s27 + $0x1c0] sm:$0xf] }
 0x107   : > { %v1250_v22 = vpop.f32.mrf.mxu2 }
 0x108   : > { %v2330_v24 = vpack.c.bf16 %v1504_v20, %v1503_v17  ;;  %v1339_v28 = vpop.f32.mrf.mxu3  ;;  %v1251_v30 = vadd.f32 %v1250_v22, %v1162_v27 }
 0x109   : > { %v1163_v29 = vpop.f32.mrf.mxu1 }
 0x10a   : > { %2331 = vst [vmem:[%s3000_s23] sm:$0xff] %v2330_v24   ;;  %v1340_v43 = vadd.f32 %v1339_v28, %v1251_v30  ;;  %v1164_v48 = vadd.f32 %v1163_v29, %v1075_v45  ;;  %v1080_v30 = vadd.f32 %v2847_v4, %v2934_v15  ;;  %v1949_v45 = vld [vmem:[%s2687_s27 + $0x1cc] sm:$0xf0] }
 0x10b   : > { %v1430_v32 = vpop.f32.mrf.mxu0 }
 0x10c   : > { %v1429_v1 = vadd.f32 %v1428_v9, %v1340_v43  ;;  %v1963_v43 = vld [vmem:[%s2687_s27 + $0x1c8] sm:$0xf] }
 0x10e   : > { %v1505_v16 = vmax.f32 %v1429_v1, 0.0  ;;  %v1083_v1 = vadd.f32 %v2847_v4, %v2953_v42  ;;  %v1975_v42 = vld [vmem:[%s2687_s27 + $0x1e8] sm:$0xf] }
 0x10f   : > { %v1252_v57 = vpop.f32.mrf.mxu2 }
 0x110   : > { %v1253_v58 = vadd.f32 %v1252_v57, %v1164_v48  ;;  %v1341_v59 = vpop.f32.mrf.mxu3  ;;  %v2269_v48 = vld [vmem:[%s2687_s27 + $0x1d8] sm:$0xf0] }
 0x111   : > { %v1166_v63 = vpop.f32.mrf.mxu1 }
 0x112   : > { %v1342_v52 = vadd.f32 %v1341_v59, %v1253_v58  ;;  %v1167_v22 = vadd.f32 %v1166_v63, %v1078_v13  ;;  %v1956_v58 = vor.u32 %v2268_v33, %v1955_v8  ;;  %v1977_v8 = vld [vmem:[%s2687_s27 + $0x1fc] sm:$0xf0]  ;;  %v1983_v33 = vld [vmem:[%s2687_s27 + $0x1f0] sm:$0xf] }
 0x113   : > { %v1433_v5 = vpop.f32.mrf.mxu0 }
 0x114   : > { %v1431_v6 = vadd.f32 %v1430_v32, %v1342_v52  ;;  %1205 = vmatmul.bf16.gmra.mxu1 %v1932_v60  ;;  %1294 = vmatmul.bf16.gmra.mxu2 %v1936_v61  ;;  %v2265_v32 = vld [vmem:[%s2687_s27 + $0x1bc] sm:$0xf]  ;;  %v1960_v60 = vor.u32 %v2266_v34, %v1957_v39  ;;  %v1964_v61 = vor.u32 %v2269_v48, %v1963_v43  ;;  %v2274_v34 = vld [vmem:[%s2687_s27 + $0x200] sm:$0xf0] }
 0x115   : > { %1383 = vmatmul.bf16.gmra.mxu3 %v1940_v0  ;;  %v1952_v57 = vor.u32 %v2265_v32, %v1949_v45 }
 0x116   : > { %2199 = vmatmul.msk.bf16.gmra.mxu0 %vm1009_vm0, %v1944_v26  ;;  %v1506_v17 = vmax.f32 %v1431_v6, 0.0 }
 0x117   : > { %v1255_v9 = vpop.f32.mrf.mxu2 }
 0x118   : > { %v2335_v20 = vpack.c.bf16 %v1506_v17, %v1505_v16  ;;  %v1344_v24 = vpop.f32.mrf.mxu3  ;;  %v1256_v28 = vadd.f32 %v1255_v9, %v1167_v22 }
 0x119   : > { %v1168_v27 = vpop.f32.mrf.mxu1 }
 0x11a   : > { %2407 = vst [vmem:[%s3000_s23 + $0x8] sm:$0xff] %v2335_v20   ;;  %v1345_v37 = vadd.f32 %v1344_v24, %v1256_v28  ;;  %v1169_v38 = vadd.f32 %v1168_v27, %v1080_v30  ;;  %v1085_v24 = vadd.f32 %v2847_v4, %v2965_v55  ;;  %v2270_v27 = vld [vmem:[%s2687_s27 + $0x1e4] sm:$0xf]  ;;  %v1969_v28 = vld [vmem:[%s2687_s27 + $0x1f4] sm:$0xf0] }
 0x11b   : > { %v1435_v29 = vpop.f32.mrf.mxu0  ;;  %v2271_v30 = vld [vmem:[%s2687_s27 + $0x1ec] sm:$0xf]  ;;  %v1972_v43 = vor.u32 %v2270_v27, %v1969_v28 }
 0x11c   : > { %v1434_v63 = vadd.f32 %v1433_v5, %v1345_v37  ;;  %v2279_v27 = vld [vmem:[%s2687_s27 + $0x228] sm:$0xf0] }
 0x11e   : > { %v1507_v52 = vmax.f32 %v1434_v63, 0.0 }
 0x11f   : > { %v1257_v53 = vpop.f32.mrf.mxu2 }
 0x120   : > { %v1258_v19 = vadd.f32 %v1257_v53, %v1169_v38  ;;  %v1346_v56 = vpop.f32.mrf.mxu3 }
 0x121   : > { %v1171_v59 = vpop.f32.mrf.mxu1 }
 0x122   : > { %v1347_v15 = vadd.f32 %v1346_v56, %v1258_v19  ;;  %v1172_v16 = vadd.f32 %v1171_v59, %v1083_v1  ;;  %v1980_v19 = vor.u32 %v2271_v30, %v1977_v8  ;;  %v1984_v56 = vor.u32 %v2274_v34, %v1983_v33 }
 0x123   : > { %v1438_v0 = vpop.f32.mrf.mxu0 }
 0x124   : > { %v1436_v26 = vadd.f32 %v1435_v29, %v1347_v15  ;;  %1210 = vmatmul.bf16.gmra.mxu1 %v1952_v57  ;;  %1299 = vmatmul.bf16.gmra.mxu2 %v1956_v58  ;;  %v2273_v29 = vld [vmem:[%s2687_s27 + $0x1f8] sm:$0xf0] }
 0x125   : > { %1388 = vmatmul.bf16.gmra.mxu3 %v1960_v60  ;;  %v1976_v48 = vor.u32 %v2273_v29, %v1975_v42 }
 0x126   : > { %2200 = vmatmul.msk.bf16.gmra.mxu0 %vm1009_vm0, %v1964_v61  ;;  %v1508_v6 = vmax.f32 %v1436_v26, 0.0 }
 0x127   : > { %v1260_v5 = vpop.f32.mrf.mxu2 }
 0x128   : > { %v2340_v13 = vpack.c.bf16 %v1508_v6, %v1507_v52  ;;  %v1349_v17 = vpop.f32.mrf.mxu3  ;;  %v1261_v20 = vadd.f32 %v1260_v5, %v1172_v16  ;;  %v2275_v6 = vld [vmem:[%s2687_s27 + $0x20c] sm:$0xf]  ;;  %v1989_v5 = vld [vmem:[%s2687_s27 + $0x21c] sm:$0xf0]  ;;  %v2278_v16 = vld [vmem:[%s2687_s27 + $0x220] sm:$0xf0] }
 0x129   : > { %v1173_v9 = vpop.f32.mrf.mxu1 }
 0x12a   : > { %2408 = vst [vmem:[%s3000_s23 + $0x10] sm:$0xff] %v2340_v13   ;;  %v1350_v32 = vadd.f32 %v1349_v17, %v1261_v20  ;;  %v1174_v45 = vadd.f32 %v1173_v9, %v1085_v24  ;;  %v1995_v13 = vld [vmem:[%s2687_s27 + $0x210] sm:$0xf]  ;;  %v2276_v17 = vld [vmem:[%s2687_s27 + $0x214] sm:$0xf] }
 0x12b   : > { %v1440_v22 = vpop.f32.mrf.mxu0  ;;  %v2003_v24 = vld [vmem:[%s2687_s27 + $0x218] sm:$0xf]  ;;  %v1996_v30 = vor.u32 %v2278_v16, %v1995_v13 }
 0x12c   : > { %v1439_v4 = vadd.f32 %v1438_v0, %v1350_v32  ;;  %v2004_v8 = vor.u32 %v2279_v27, %v2003_v24 }
 0x12e   : > { %v1509_v59 = vmax.f32 %v1439_v4, 0.0 }
 0x12f   : > { %v1262_v37 = vpop.f32.mrf.mxu2 }
 0x130   : > { %v1263_v38 = vadd.f32 %v1262_v37, %v1174_v45  ;;  %v1351_v39 = vpop.f32.mrf.mxu3 }
 0x131   : > { %v1176_v53 = vpop.f32.mrf.mxu1 }
 0x132   : > { %v1352_v55 = vadd.f32 %v1351_v39, %v1263_v38  ;;  %v1177_v15 = vadd.f32 %v1176_v53, %v2858_v18  ;;  %v1992_v18 = vor.u32 %v2275_v6, %v1989_v5 }
 0x133   : > { %v1443_v57 = vpop.f32.mrf.mxu0 }
 0x134   : > { %v1441_v58 = vadd.f32 %v1440_v22, %v1352_v55  ;;  %1215 = vmatmul.bf16.gmra.mxu1 %v1972_v43  ;;  %1304 = vmatmul.bf16.gmra.mxu2 %v1976_v48  ;;  %v1997_v22 = vld [vmem:[%s2687_s27 + $0x224] sm:$0xf0] }
 0x135   : > { %1393 = vmatmul.bf16.gmra.mxu3 %v1980_v19  ;;  %v2000_v45 = vor.u32 %v2276_v17, %v1997_v22 }
 0x136   : > { %2201 = vmatmul.msk.bf16.gmra.mxu0 %vm1009_vm0, %v1984_v56  ;;  %v1510_v60 = vmax.f32 %v1441_v58, 0.0  ;;  %v2009_v58 = vld [vmem:[%s2687_s27 + $0x244] sm:$0xf0] }
 0x137   : > { %v1265_v61 = vpop.f32.mrf.mxu2 }
 0x138   : > { %v2345_v63 = vpack.c.bf16 %v1510_v60, %v1509_v59  ;;  %v1354_v0 = vpop.f32.mrf.mxu3  ;;  %v1266_v1 = vadd.f32 %v1265_v61, %v1177_v15  ;;  %v2015_v59 = vld [vmem:[%s2687_s27 + $0x238] sm:$0xf]  ;;  %v2283_v60 = vld [vmem:[%s2687_s27 + $0x248] sm:$0xf0]  ;;  %v2281_v61 = vld [vmem:[%s2687_s27 + $0x23c] sm:$0xf] }
 0x139   : > { %v1178_v26 = vpop.f32.mrf.mxu1  ;;  %v2016_v13 = vor.u32 %v2283_v60, %v2015_v59 }
 0x13a   : > { %2409 = vst [vmem:[%s3000_s23 + $0x18] sm:$0xff] %v2345_v63   ;;  %v1355_v9 = vadd.f32 %v1354_v0, %v1266_v1  ;;  %v1179_v20 = vadd.f32 %v1178_v26, %v2870_v25  ;;  %v2017_v0 = vld [vmem:[%s2687_s27 + $0x24c] sm:$0xf0]  ;;  %v2023_v26 = vld [vmem:[%s2687_s27 + $0x240] sm:$0xf] }
 0x13b   : > { %v1445_v52 = vpop.f32.mrf.mxu0  ;;  %v2284_v1 = vld [vmem:[%s2687_s27 + $0x250] sm:$0xf0]  ;;  %v2020_v17 = vor.u32 %v2281_v61, %v2017_v0 }
 0x13c   : > { %v1444_v33 = vadd.f32 %v1443_v57, %v1355_v9  ;;  %v2280_v57 = vld [vmem:[%s2687_s27 + $0x234] sm:$0xf]  ;;  %v2024_v9 = vor.u32 %v2284_v1, %v2023_v26 }
 0x13e   : > { %v1511_v25 = vmax.f32 %v1444_v33, 0.0  ;;  %v2285_v33 = vld [vmem:[%s2687_s27 + $0x25c] sm:$0xf] }
 0x13f   : > { %v1267_v28 = vpop.f32.mrf.mxu2 }
 0x140   : > { %v1268_v42 = vadd.f32 %v1267_v28, %v1179_v20  ;;  %v1356_v29 = vpop.f32.mrf.mxu3 }
 0x141   : > { %v1181_v32 = vpop.f32.mrf.mxu1 }
 0x142   : > { %v1357_v34 = vadd.f32 %v1356_v29, %v1268_v42  ;;  %v1182_v53 = vadd.f32 %v1181_v32, %v2889_v44  ;;  %v2012_v44 = vor.u32 %v2280_v57, %v2009_v58 }
 0x143   : > { %v1448_v37 = vpop.f32.mrf.mxu0 }
 0x144   : > { %v1446_v38 = vadd.f32 %v1445_v52, %v1357_v34  ;;  %1220 = vmatmul.bf16.gmra.mxu1 %v1992_v18  ;;  %1309 = vmatmul.bf16.gmra.mxu2 %v1996_v30  ;;  %v2029_v34 = vld [vmem:[%s2687_s27 + $0x26c] sm:$0xf0] }
 0x145   : > { %1398 = vmatmul.bf16.gmra.mxu3 %v2000_v45 }
 0x146   : > { %2202 = vmatmul.msk.bf16.gmra.mxu0 %vm1009_vm0, %v2004_v8  ;;  %v1512_v39 = vmax.f32 %v1446_v38, 0.0  ;;  %v2288_v38 = vld [vmem:[%s2687_s27 + $0x270] sm:$0xf0] }
 0x147   : > { %v1270_v43 = vpop.f32.mrf.mxu2 }
 0x148   : > { %v2350_v48 = vpack.c.bf16 %v1512_v39, %v1511_v25  ;;  %v1359_v19 = vpop.f32.mrf.mxu3  ;;  %v1271_v4 = vadd.f32 %v1270_v43, %v1182_v53  ;;  %v2286_v25 = vld [vmem:[%s2687_s27 + $0x264] sm:$0xf]  ;;  %v2043_v53 = vld [vmem:[%s2687_s27 + $0x268] sm:$0xf] }
 0x149   : > { %v1183_v56 = vpop.f32.mrf.mxu1 }
 0x14a   : > { %2410 = vst [vmem:[%s3000_s23 + $0x20] sm:$0xff] %v2350_v48   ;;  %v1360_v63 = vadd.f32 %v1359_v19, %v1271_v4  ;;  %v1184_v15 = vadd.f32 %v1183_v56, %v2901_v51  ;;  %v2037_v48 = vld [vmem:[%s2687_s27 + $0x274] sm:$0xf0]  ;;  %v2289_v19 = vld [vmem:[%s2687_s27 + $0x278] sm:$0xf0] }
 0x14b   : > { %v1450_v55 = vpop.f32.mrf.mxu0  ;;  %v2040_v59 = vor.u32 %v2286_v25, %v2037_v48  ;;  %v2044_v60 = vor.u32 %v2289_v19, %v2043_v53 }
 0x14c   : > { %v1449_v20 = vadd.f32 %v1448_v37, %v1360_v63  ;;  %v2035_v37 = vld [vmem:[%s2687_s27 + $0x260] sm:$0xf]  ;;  %s2326_s27 = sshll.u32 %s2575_s15, 7  ;;  %s1600_s15 = scalar_lea.sflag [#allocation3], %s202_s19 }
 0x14d   : > { %v2036_v57 = vor.u32 %v2288_v38, %v2035_v37  ;;  %s1612_s29 = scalar_lea.hbm %s3148_s3, %s2326_s27 }
 0x14e   : > { %v1513_v51 = vmax.f32 %v1449_v20, 0.0  ;;  %s1615_s4 = sshll.u32 %s1612_s29, 4  ;;  %s1616_s4 = int_to_ptr.hbm [resolvable:$true] %s1615_s4 }
 0x14f   : > { %v1272_v52 = vpop.f32.mrf.mxu2  ;;  %s2519_s5 = sshra.s32 %s1616_s4, 4  ;;  %s2520_s5 = int_to_ptr.hbm [resolvable:$true] %s2519_s5 }
 0x150   : > { %v1273_v6 = vadd.f32 %v1272_v52, %v1184_v15  ;;  %v1361_v5 = vpop.f32.mrf.mxu3  ;;  %s2521_s6 = scalar_lea.hbm %s2520_s5, 128  ;;  %p2526_p1 = scmp.lt.s32.totalorder %s2520_s5, %s3148_s3 }
 0x151   : > { %v1186_v16 = vpop.f32.mrf.mxu1  ;;  %p2522_p12 = scmp.ne.s32.totalorder %s2520_s5, %s2521_s6  ;;  %p2527_p2 = scmp.lt.s32.totalorder %s2525_s9, %s2521_s6 }
 0x152   : > { %v1362_v22 = vadd.f32 %v1361_v5, %v1273_v6  ;;  %v1187_v18 = vadd.f32 %v1186_v16, %v2920_v7  ;;  %v2032_v7 = vor.u32 %v2285_v33, %v2029_v34 }
 0x153   : > { %v1453_v24 = vpop.f32.mrf.mxu0  ;;  %p2523_p13 = pnand %p2522_p12, %p2647_p4  ;;  %p2528_p3 = por %p2527_p2, %p2526_p1 }
 0x154   : > { %v1451_v27 = vadd.f32 %v1450_v55, %v1362_v22  ;;  %1225 = vmatmul.bf16.gmra.mxu1 %v2012_v44  ;;  %1314 = vmatmul.bf16.gmra.mxu2 %v2016_v13 }
 0x155   : > { %1403 = vmatmul.bf16.gmra.mxu3 %v2020_v17  ;;  %p2524_p0 = pneg %p2523_p13 }
 0x156   : > { %2203 = vmatmul.msk.bf16.gmra.mxu0 %vm1009_vm0, %v2024_v9  ;;  %v1514_v28 = vmax.f32 %v1451_v27, 0.0 }
 0x157   : > { %v1275_v42 = vpop.f32.mrf.mxu2  ;;  %p2529_p5 = pnand %p2528_p3, %p2524_p0 }
 0x158   : > { %v2355_v29 = vpack.c.bf16 %v1514_v28, %v1513_v51  ;;  %v1364_v30 = vpop.f32.mrf.mxu3  ;;  %v1276_v45 = vadd.f32 %v1275_v42, %v1187_v18 }
 0x159   : > { %v1188_v32 = vpop.f32.mrf.mxu1 }
 0x15a   : > { %2411 = vst [vmem:[%s3000_s23 + $0x28] sm:$0xff] %v2355_v29   ;;  %v1365_v39 = vadd.f32 %v1364_v30, %v1276_v45  ;;  %v1189_v43 = vadd.f32 %v1188_v32, %v2932_v14 }
 0x15b   : > { %v1455_v8 = vpop.f32.mrf.mxu0 }
 0x15c   : > { %v1454_v61 = vadd.f32 %v1453_v24, %v1365_v39 }
 0x15e   : > { %v1515_v14 = vmax.f32 %v1454_v61, 0.0 }
 0x15f   : > { %v1277_v56 = vpop.f32.mrf.mxu2 }
 0x160   : > { %v1278_v4 = vadd.f32 %v1277_v56, %v1189_v43  ;;  %v1366_v55 = vpop.f32.mrf.mxu3 }
 0x161   : > { %v1191_v58 = vpop.f32.mrf.mxu1 }
 0x162   : > { %v1367_v63 = vadd.f32 %v1366_v55, %v1278_v4  ;;  %v1192_v6 = vadd.f32 %v1191_v58, %v2951_v41 }
 0x163   : > { %v1458_v15 = vpop.f32.mrf.mxu0 }
 0x164   : > { %v1456_v0 = vadd.f32 %v1455_v8, %v1367_v63  ;;  %1230 = vmatmul.bf16.gmra.mxu1 %v2032_v7  ;;  %1319 = vmatmul.bf16.gmra.mxu2 %v2036_v57 }
 0x165   : > { %1408 = vmatmul.bf16.gmra.mxu3 %v2040_v59 }
 0x166   : > { %2204 = vmatmul.msk.bf16.gmra.mxu0 %vm1009_vm0, %v2044_v60  ;;  %v1516_v26 = vmax.f32 %v1456_v0, 0.0 }
 0x167   : > { %v1280_v1 = vpop.f32.mrf.mxu2 }
 0x168   : > { %v2360_v52 = vpack.c.bf16 %v1516_v26, %v1515_v14  ;;  %v1369_v5 = vpop.f32.mrf.mxu3  ;;  %v1281_v13 = vadd.f32 %v1280_v1, %v1192_v6 }
 0x169   : > { %v1193_v44 = vpop.f32.mrf.mxu1 }
 0x16a   : > { %2412 = vst [vmem:[%s3000_s23 + $0x30] sm:$0xff] %v2360_v52   ;;  %v1370_v17 = vadd.f32 %v1369_v5, %v1281_v13  ;;  %v1194_v9 = vadd.f32 %v1193_v44, %v2963_v54 }
 0x16b   : > { %v1460_v16 = vpop.f32.mrf.mxu0 }
 0x16c   : > { %v1459_v51 = vadd.f32 %v1458_v15, %v1370_v17 }
 0x16e   : > { %v1517_v18 = vmax.f32 %v1459_v51, 0.0 }
 0x16f   : > { %v1282_v20 = vpop.f32.mrf.mxu2 }
 0x170   : > { %v1283_v22 = vadd.f32 %v1282_v20, %v1194_v9  ;;  %v1371_v24 = vpop.f32.mrf.mxu3 }
 0x171   : > { %v1196_v27 = vpop.f32.mrf.mxu1 }
 0x172   : > { %v1372_v28 = vadd.f32 %v1371_v24, %v1283_v22  ;;  %v1197_v45 = vadd.f32 %v1196_v27, %v2864_v21 }
 0x173   : > { %v1463_v42 = vpop.f32.mrf.mxu0 }
 0x174   : > { %v1461_v29 = vadd.f32 %v1460_v16, %v1372_v28 }
 0x176   : > { %v1518_v30 = vmax.f32 %v1461_v29, 0.0 }
 0x177   : > { %v1285_v41 = vpop.f32.mrf.mxu2 }
 0x178   : > { %v2365_v32 = vpack.c.bf16 %v1518_v30, %v1517_v18  ;;  %v1374_v8 = vpop.f32.mrf.mxu3  ;;  %v1286_v34 = vadd.f32 %v1285_v41, %v1197_v45 }
 0x179   : > { %v1198_v33 = vpop.f32.mrf.mxu1 }
 0x17a   : > { %2413 = vst [vmem:[%s3000_s23 + $0x38] sm:$0xff] %v2365_v32   ;;  %v1375_v37 = vadd.f32 %v1374_v8, %v1286_v34  ;;  %v1199_v38 = vadd.f32 %v1198_v33, %v2883_v36 }
 0x17b   : > { %v1465_v54 = vpop.f32.mrf.mxu0 }
 0x17c   : > { %v1464_v53 = vadd.f32 %v1463_v42, %v1375_v37 }
 0x17e   : > { %v1519_v55 = vmax.f32 %v1464_v53, 0.0 }
 0x17f   : > { %v1287_v25 = vpop.f32.mrf.mxu2 }
 0x180   : > { %v1288_v39 = vadd.f32 %v1287_v25, %v1199_v38  ;;  %v1376_v43 = vpop.f32.mrf.mxu3 }
 0x181   : > { %v1201_v48 = vpop.f32.mrf.mxu1 }
 0x182   : > { %v1377_v19 = vadd.f32 %v1376_v43, %v1288_v39  ;;  %v1202_v58 = vadd.f32 %v1201_v48, %v2895_v47 }
 0x183   : > { %v1468_v56 = vpop.f32.mrf.mxu0 }
 0x184   : > { %v1466_v4 = vadd.f32 %v1465_v54, %v1377_v19 }
 0x186   : > { %v1520_v7 = vmax.f32 %v1466_v4, 0.0 }
 0x187   : > { %v1290_v21 = vpop.f32.mrf.mxu2 }
 0x188   : > { %v2370_v57 = vpack.c.bf16 %v1520_v7, %v1519_v55  ;;  %v1379_v59 = vpop.f32.mrf.mxu3  ;;  %v1291_v61 = vadd.f32 %v1290_v21, %v1202_v58 }
 0x189   : > { %v1203_v60 = vpop.f32.mrf.mxu1 }
 0x18a   : > { %2414 = vst [vmem:[%s3000_s23 + $0x40] sm:$0xff] %v2370_v57   ;;  %v1380_v63 = vadd.f32 %v1379_v59, %v1291_v61  ;;  %v1204_v15 = vadd.f32 %v1203_v60, %v2914_v62 }
 0x18b   : > { %v1470_v36 = vpop.f32.mrf.mxu0 }
 0x18c   : > { %v1469_v52 = vadd.f32 %v1468_v56, %v1380_v63 }
 0x18e   : > { %v1521_v13 = vmax.f32 %v1469_v52, 0.0 }
 0x18f   : > { %v1292_v0 = vpop.f32.mrf.mxu2 }
 0x190   : > { %v1293_v14 = vadd.f32 %v1292_v0, %v1204_v15  ;;  %v1381_v26 = vpop.f32.mrf.mxu3 }
 0x191   : > { %v1206_v1 = vpop.f32.mrf.mxu1 }
 0x192   : > { %v1382_v6 = vadd.f32 %v1381_v26, %v1293_v14  ;;  %v1207_v9 = vadd.f32 %v1206_v1, %v2926_v10 }
 0x193   : > { %v1473_v5 = vpop.f32.mrf.mxu0 }
 0x194   : > { %v1471_v44 = vadd.f32 %v1470_v36, %v1382_v6 }
 0x196   : > { %v1522_v16 = vmax.f32 %v1471_v44, 0.0 }
 0x197   : > { %v1295_v47 = vpop.f32.mrf.mxu2 }
 0x198   : > { %v2375_v17 = vpack.c.bf16 %v1522_v16, %v1521_v13  ;;  %v1384_v20 = vpop.f32.mrf.mxu3  ;;  %v1296_v24 = vadd.f32 %v1295_v47, %v1207_v9 }
 0x199   : > { %v1208_v22 = vpop.f32.mrf.mxu1 }
 0x19a   : > { %2415 = vst [vmem:[%s3000_s23 + $0x48] sm:$0xff] %v2375_v17   ;;  %v1385_v27 = vadd.f32 %v1384_v20, %v1296_v24  ;;  %v1209_v51 = vadd.f32 %v1208_v22, %v2945_v31 }
 0x19b   : > { %v1475_v62 = vpop.f32.mrf.mxu0 }
 0x19c   : > { %v1474_v30 = vadd.f32 %v1473_v5, %v1385_v27 }
 0x19e   : > { %v1523_v8 = vmax.f32 %v1474_v30, 0.0 }
 0x19f   : > { %v1297_v28 = vpop.f32.mrf.mxu2 }
 0x1a0   : > { %v1298_v42 = vadd.f32 %v1297_v28, %v1209_v51  ;;  %v1386_v29 = vpop.f32.mrf.mxu3 }
 0x1a1   : > { %v1211_v18 = vpop.f32.mrf.mxu1 }
 0x1a2   : > { %v1387_v41 = vadd.f32 %v1386_v29, %v1298_v42  ;;  %v1212_v54 = vadd.f32 %v1211_v18, %v2957_v46 }
 0x1a3   : > { %v1478_v32 = vpop.f32.mrf.mxu0 }
 0x1a4   : > { %v1476_v45 = vadd.f32 %v1475_v62, %v1387_v41 }
 0x1a6   : > { %v1524_v33 = vmax.f32 %v1476_v45, 0.0 }
 0x1a7   : > { %v1300_v10 = vpop.f32.mrf.mxu2 }
 0x1a8   : > { %v2380_v34 = vpack.c.bf16 %v1524_v33, %v1523_v8  ;;  %v1389_v37 = vpop.f32.mrf.mxu3  ;;  %v1301_v25 = vadd.f32 %v1300_v10, %v1212_v54 }
 0x1a9   : > { %v1213_v38 = vpop.f32.mrf.mxu1 }
 0x1aa   : > { %2416 = vst [vmem:[%s3000_s23 + $0x50] sm:$0xff] %v2380_v34   ;;  %v1390_v39 = vadd.f32 %v1389_v37, %v1301_v25  ;;  %v1214_v43 = vadd.f32 %v1213_v38, %v2976_v3 }
 0x1ab   : > { %v1480_v31 = vpop.f32.mrf.mxu0 }
 0x1ac   : > { %v1479_v4 = vadd.f32 %v1478_v32, %v1390_v39 }
 0x1ae   : > { %v1525_v57 = vmax.f32 %v1479_v4, 0.0 }
 0x1af   : > { %v1302_v48 = vpop.f32.mrf.mxu2 }
 0x1b0   : > { %v1303_v53 = vadd.f32 %v1302_v48, %v1214_v43  ;;  %v1391_v19 = vpop.f32.mrf.mxu3 }
 0x1b1   : > { %v1216_v56 = vpop.f32.mrf.mxu1 }
 0x1b2   : > { %v1392_v55 = vadd.f32 %v1391_v19, %v1303_v53  ;;  %v1217_v60 = vadd.f32 %v1216_v56, %v2867_v23 }
 0x1b3   : > { %v1483_v7 = vpop.f32.mrf.mxu0 }
 0x1b4   : > { %v1481_v21 = vadd.f32 %v1480_v31, %v1392_v55 }
 0x1b6   : > { %v1526_v58 = vmax.f32 %v1481_v21, 0.0 }
 0x1b7   : > { %v1305_v46 = vpop.f32.mrf.mxu2 }
 0x1b8   : > { %v2385_v59 = vpack.c.bf16 %v1526_v58, %v1525_v57  ;;  %v1394_v61 = vpop.f32.mrf.mxu3  ;;  %v1306_v63 = vadd.f32 %v1305_v46, %v1217_v60 }
 0x1b9   : > { %v1218_v36 = vpop.f32.mrf.mxu1 }
 0x1ba   : > { %2417 = vst [vmem:[%s3000_s23 + $0x58] sm:$0xff] %v2385_v59   ;;  %v1395_v15 = vadd.f32 %v1394_v61, %v1306_v63  ;;  %v1219_v0 = vadd.f32 %v1218_v36, %v2886_v40 }
 0x1bb   : > { %v1485_v3 = vpop.f32.mrf.mxu0 }
 0x1bc   : > { %v1484_v6 = vadd.f32 %v1483_v7, %v1395_v15 }
 0x1be   : > { %v1527_v16 = vmax.f32 %v1484_v6, 0.0 }
 0x1bf   : > { %v1307_v14 = vpop.f32.mrf.mxu2 }
 0x1c0   : > { %v1308_v26 = vadd.f32 %v1307_v14, %v1219_v0  ;;  %v1396_v1 = vpop.f32.mrf.mxu3 }
 0x1c1   : > { %v1221_v52 = vpop.f32.mrf.mxu1 }
 0x1c2   : > { %v1397_v5 = vadd.f32 %v1396_v1, %v1308_v26  ;;  %v1222_v9 = vadd.f32 %v1221_v52, %v2898_v49 }
 0x1c3   : > { %v1488_v44 = vpop.f32.mrf.mxu0 }
 0x1c4   : > { %v1486_v13 = vadd.f32 %v1485_v3, %v1397_v5 }
 0x1c6   : > { %v1528_v47 = vmax.f32 %v1486_v13, 0.0 }
 0x1c7   : > { %v1310_v23 = vpop.f32.mrf.mxu2 }
 0x1c8   : > { %v2390_v17 = vpack.c.bf16 %v1528_v47, %v1527_v16  ;;  %v1399_v20 = vpop.f32.mrf.mxu3  ;;  %v1311_v24 = vadd.f32 %v1310_v23, %v1222_v9 }
 0x1c9   : > { %v1223_v22 = vpop.f32.mrf.mxu1 }
 0x1ca   : > { %2418 = vst [vmem:[%s3000_s23 + $0x60] sm:$0xff] %v2390_v17   ;;  %v1400_v62 = vadd.f32 %v1399_v20, %v1311_v24  ;;  %v1224_v27 = vadd.f32 %v1223_v22, %v2917_v2 }
 0x1cb   : > { %v1490_v40 = vpop.f32.mrf.mxu0 }
 0x1cc   : > { %v1489_v18 = vadd.f32 %v1488_v44, %v1400_v62 }
 0x1ce   : > { %v1529_v45 = vmax.f32 %v1489_v18, 0.0 }
 0x1cf   : > { %v1312_v51 = vpop.f32.mrf.mxu2 }
 0x1d0   : > { %v1313_v28 = vadd.f32 %v1312_v51, %v1224_v27  ;;  %v1401_v42 = vpop.f32.mrf.mxu3 }
 0x1d1   : > { %v1226_v29 = vpop.f32.mrf.mxu1 }
 0x1d2   : > { %v1402_v30 = vadd.f32 %v1401_v42, %v1313_v28  ;;  %v1227_v10 = vadd.f32 %v1226_v29, %v2929_v12 }
 0x1d3   : > { %v1493_v32 = vpop.f32.mrf.mxu0 }
 0x1d4   : > { %v1491_v41 = vadd.f32 %v1490_v40, %v1402_v30 }
 0x1d6   : > { %v1530_v8 = vmax.f32 %v1491_v41, 0.0 }
 0x1d7   : > { %v1315_v49 = vpop.f32.mrf.mxu2 }
 0x1d8   : > { %v2395_v33 = vpack.c.bf16 %v1530_v8, %v1529_v45  ;;  %v1404_v34 = vpop.f32.mrf.mxu3  ;;  %v1316_v37 = vadd.f32 %v1315_v49, %v1227_v10 }
 0x1d9   : > { %v1228_v54 = vpop.f32.mrf.mxu1 }
 0x1da   : > { %2419 = vst [vmem:[%s3000_s23 + $0x68] sm:$0xff] %v2395_v33   ;;  %v1405_v2 = vadd.f32 %v1404_v34, %v1316_v37  ;;  %v1229_v38 = vadd.f32 %v1228_v54, %v2948_v35 }
 0x1db   : > { %v1495_v25 = vpop.f32.mrf.mxu0 }
 0x1dc   : > { %v1494_v53 = vadd.f32 %v1493_v32, %v1405_v2 }
 0x1de   : > { %v1531_v4 = vmax.f32 %v1494_v53, 0.0 }
 0x1df   : > { %v1317_v31 = vpop.f32.mrf.mxu2 }
 0x1e0   : > { %v1318_v39 = vadd.f32 %v1317_v31, %v1229_v38  ;;  %v1406_v43 = vpop.f32.mrf.mxu3 }
 0x1e1   : > { %v1231_v48 = vpop.f32.mrf.mxu1 }
 0x1e2   : > { %v1407_v19 = vadd.f32 %v1406_v43, %v1318_v39  ;;  %v1232_v21 = vadd.f32 %v1231_v48, %v2960_v50 }
 0x1e3   : > { %v1498_v58 = vpop.f32.mrf.mxu0 }
 0x1e4   : > { %v1496_v56 = vadd.f32 %v1495_v25, %v1407_v19 }
 0x1e6   : > { %v1532_v55 = vmax.f32 %v1496_v56, 0.0 }
 0x1e7   : > { %v1320_v12 = vpop.f32.mrf.mxu2 }
 0x1e8   : > { %v2400_v7 = vpack.c.bf16 %v1532_v55, %v1531_v4  ;;  %v1409_v57 = vpop.f32.mrf.mxu3  ;;  %v1321_v35 = vadd.f32 %v1320_v12, %v1232_v21 }
 0x1e9   : > { %v1233_v46 = vpop.f32.mrf.mxu1 }
 0x1ea   : > { %2420 = vst [vmem:[%s3000_s23 + $0x70] sm:$0xff] %v2400_v7   ;;  %v1410_v59 = vadd.f32 %v1409_v57, %v1321_v35  ;;  %v1234_v60 = vadd.f32 %v1233_v46, %v2979_v11 }
 0x1eb   : > { %v1500_v15 = vpop.f32.mrf.mxu0 }
 0x1ec   : > { %v1499_v50 = vadd.f32 %v1498_v58, %v1410_v59 }
 0x1ee   : > { %v1533_v14 = vmax.f32 %v1499_v50, 0.0 }
 0x1ef   : > { %v1322_v61 = vpop.f32.mrf.mxu2 }
 0x1f0   : > { %v1323_v36 = vadd.f32 %v1322_v61, %v1234_v60  ;;  %v1411_v63 = vpop.f32.mrf.mxu3 }
 0x1f2   : > { %v1412_v3 = vadd.f32 %v1411_v63, %v1323_v36 }
 0x1f4   : > { %v1501_v0 = vadd.f32 %v1500_v15, %v1412_v3 }
 0x1f6   : > { %v1534_v26 = vmax.f32 %v1501_v0, 0.0 }
 0x1f8   : > { %v2405_v11 = vpack.c.bf16 %v1534_v26, %v1533_v14 }
 0x1fa   : > { %2421 = vst [vmem:[%s3000_s23 + $0x78] sm:$0xff] %v2405_v11  }
 0x1fb   : > { %2532 = shalt.err (!%p2529_p5)
}
 0x1fc   : > { %s2585_s18 = smov 64   ;;  %s2586_s19 = smov 4  }
 0x1fd   : > { %2447 = dma.vmem_to_hbm [thread:$0]  (%p2647_p4), %s1614_s30, 2048, %s1616_s4, %s1600_s15, %s2585_s18, %s2585_s18, %s2586_s19  }
 0x1fe PF: > { %p2453_p6 = scmp.ge.s32.totalorder %s2583_s17, 2  ;;  %s1630_s21 = sand.u32 1, %s2563_s12  }
 0x1ff   : > { %s1631_s23 = scalar_lea.sflag [#allocation3], %s1630_s21 }
 0x200   : > { %p2450_p7 = pnand %p2453_p6, %p2654_p8 }
 0x202   : > { %p2451_p9 = pneg %p2450_p7 }
 0x204   : > { %2558 = dma.done.wait (%p2451_p9), %s1631_s23, 2048  }
 0x205   : > { %2560 = vsyncadd (%p2451_p9), %s1631_s23, 4294965248  ;;  %s16_s17 = sadd.s32 1, %s2583_s17   ;;  %s3151_s12 = smov %s2567_s13 }
 0x206   : > { %p13_p10 = scmp.ge.s32.totalorder %s16_s17, 4   ;;  %s3152_s13 = smov %s2571_s14 }
 0x207   : > { %s3153_s14 = smov %s2660_s25  ;;  %s3154_s15 = smov %s2579_s16 }
 0x208   : > { %s3155_s16 = smov %s3157_s20  ;;  %15 = sbr.rel (!%p13_p10) target bundleno = 4 (0x4), region = 73 }
 0x20d   :  { %1637 = vsyncpa [#allocation3], 1 }
 0x20e   :  { %1639 = vsyncpa [#allocation3 + $0x1], 1 }

</bundles_post_ra>
